<compile_context>
chip_gen: v7x
topology: tpu7x:2x2x1
jax: 0.10.0
libtpu: 0.0.40
codegen_flags: <defaults>
</compile_context>

<pallas_src>
import jax
import jax.numpy as jnp
import numpy as np
from jax.experimental import pallas as pl
from jax.experimental.pallas import tpu as pltpu

BERT_DIM = 768        # BERT.dimension
HIDDEN_DIM = 32       # MLP hidden_dim
NUM_LABELS = 8        # len(label_vocab)
LANES = 128           # TPU lane width; output slab width


def _phrase_kernel(con_ref, w_rc_ref, w_had_ref, b1_ref, w2_ref, b2_ref, out_ref):
    """One batch-block: pairwise features (via W1 split) + 2-layer MLP.

    con_ref   : (bb, T, H)        span representations (f32)
    w_rc_ref  : (H, 2*hid)        [W1[:H]+W1[2H:3H] | W1[H:2H]-W1[2H:3H]] (f32)
    w_had_ref : (H, hid)          W1[3H:]  (Hadamard term weight, f32)
    b1_ref    : (1, hid)          first-layer bias
    w2_ref    : (hid, lbl)        scorer weight
    b2_ref    : (1, lbl)          scorer bias
    out_ref   : (bb, T*T, 128)    lane-dense slab; lanes [0:hid] = dense,
                                  lanes [hid:hid+lbl] = score.
    """
    c = con_ref[...]                                     # (bb, T, H)
    bb, T, H = c.shape
    hid = w_had_ref.shape[1]
    lbl = w2_ref.shape[1]

    # Fused row/column contributions: ONE small (bb*T, H) @ (H, 2*hid) matmul.
    c2 = c.reshape(bb * T, H)
    rc = jnp.dot(c2, w_rc_ref[...], preferred_element_type=jnp.float32)  # (bb*T, 2*hid)
    r4 = rc[:, :hid].reshape(bb, T, hid)[:, :, None, :]   # row term, bcast over col j
    s4 = rc[:, hid:].reshape(bb, T, hid)[:, None, :, :]   # col term, bcast over row i

    # Hadamard term: the only T^2-row matmul (K = H, not 4H).  Kept f32 to
    # match the highest-precision reference; cast the outer product to bf16
    # here on v6e/v7x if tolerance permits (halves the largest intermediate).
    had = (c[:, :, None, :] * c[:, None, :, :]).reshape(bb * T * T, H)
    h = jnp.dot(had, w_had_ref[...],
                preferred_element_type=jnp.float32)                      # (bb*T*T, hid)

    pre = h.reshape(bb, T, T, hid) + r4 + s4 + b1_ref[...]
    dense = jnp.tanh(pre)                                                # (bb, T, T, hid)
    dense2 = dense.reshape(bb * T * T, hid)
    score = jnp.dot(dense2, w2_ref[...],
                    preferred_element_type=jnp.float32) + b2_ref[...]    # (bb*T*T, lbl)

    # Single output slab: two static lane-range stores into the 128-lane block
    # (the HBM writeback DMA stays one contiguous lane-dense stream).
    out_ref[:, :, pl.ds(0, hid)] = dense.reshape(bb, T * T, hid)
    out_ref[:, :, pl.ds(hid, lbl)] = score.reshape(bb, T * T, lbl)


def preprocess_weights(w1, b1, w2, b2):
    """One-time (model-load) weight preprocessing — NOT on the per-call path.

    Folds the pairwise concat [row, col, row-col, row*col] @ W1 into
      row @ (W1a + W1c) + col @ (W1b - W1c) + (row*col) @ W1d,
    and fuses the row/col weights along N so the kernel issues one matmul.
    """
    H = w1.shape[0] // 4
    w_row = w1[:H] + w1[2 * H:3 * H]          # acts on ext_row
    w_col = w1[H:2 * H] - w1[2 * H:3 * H]     # acts on ext_column
    w_rc = jnp.concatenate([w_row, w_col], axis=1)   # (H, 2*hid)
    w_had = w1[3 * H:]                                # (H, hid)
    return (jnp.asarray(w_rc, jnp.float32),
            jnp.asarray(w_had, jnp.float32),
            jnp.asarray(b1, jnp.float32).reshape(1, -1),
            jnp.asarray(w2, jnp.float32),
            jnp.asarray(b2, jnp.float32).reshape(1, -1))


@jax.jit
def phrase_classifier_pallas(con_repr, w_rc, w_had, b1, w2, b2):
    """Returns (classifier(table), classifier.get_dense(table)) like the torch module."""
    B, T, H = con_repr.shape
    hid = w_had.shape[1]
    lbl = w2.shape[1]
    assert hid + lbl <= LANES, "dense+score channels must fit one lane slab"

    # Single grid step: B*T*T = 128 pair rows << ~512-row threshold where an
    # extra grid step pays for its ~0.35 us overhead.  For v7x with larger B,
    # use batch_block = pl.cdiv(B, 2) so ("parallel",) shards across both TCs.
    batch_block = B
    grid = (pl.cdiv(B, batch_block),)

    # Advisory cost hint so XLA overlaps the surrounding gather / slices.
    flops = (2 * B * T * T * H * hid          # Hadamard matmul
             + 2 * B * T * H * (2 * hid)      # fused row/col matmul
             + 2 * B * T * T * hid * lbl)     # scorer matmul
    bytes_accessed = 4 * (B * T * H + H * 2 * hid + H * hid + hid
                          + hid * lbl + lbl + B * T * T * LANES)
    transcendentals = B * T * T * hid

    out = pl.pallas_call(
        _phrase_kernel,
        out_shape=jax.ShapeDtypeStruct((B, T * T, LANES), jnp.float32),
        grid_spec=pltpu.PrefetchScalarGridSpec(
            num_scalar_prefetch=0,
            grid=grid,
            in_specs=[
                pl.BlockSpec((batch_block, T, H), lambda g: (g, 0, 0)),
                pl.BlockSpec((H, 2 * hid), lambda g: (0, 0)),
                pl.BlockSpec((H, hid), lambda g: (0, 0)),
                pl.BlockSpec((1, hid), lambda g: (0, 0)),
                pl.BlockSpec((hid, lbl), lambda g: (0, 0)),
                pl.BlockSpec((1, lbl), lambda g: (0, 0)),
            ],
            out_specs=pl.BlockSpec((batch_block, T * T, LANES),
                                   lambda g: (g, 0, 0)),
        ),
        compiler_params=pltpu.CompilerParams(
            dimension_semantics=("parallel",)),
        cost_estimate=pl.CostEstimate(flops=flops,
                                      transcendentals=transcendentals,
                                      bytes_accessed=bytes_accessed),
    )(con_repr, w_rc, w_had, b1, w2, b2)

    # Layout plumbing only: slice the two channel groups, reshape pairs -> (T, T).
    dense = out[:, :, :hid].reshape(B, T, T, hid)
    score = out[:, :, hid:hid + lbl].reshape(B, T, T, lbl)
    return score, dense


def encoder_stub(var_h, attn_mask, starts, emb_table):
    """BERT(var_h, attn_mask, starts): contextual hidden states + gather at `starts`.

    # TODO(synk): the pretrained BertModel transformer stack has no in-script
    # Pallas equivalent (it requires checkpoint weights); it is stubbed with a
    # deterministic embedding lookup.  The gather-at-start-positions semantics
    # (torch.gather along dim=-2) are preserved exactly below.
    """
    all_hidden = emb_table[var_h] * attn_mask[..., None].astype(jnp.float32)  # (B, S, H)
    con_repr = jnp.take_along_axis(all_hidden, starts[..., None], axis=1)     # (B, T, H)
    return con_repr


def reference_forward(con_repr, w1, b1, w2, b2):
    B, T, H = con_repr.shape
    row = jnp.broadcast_to(con_repr[:, :, None, :], (B, T, T, H))
    col = jnp.broadcast_to(con_repr[:, None, :, :], (B, T, T, H))
    table = jnp.concatenate([row, col, row - col, row * col], axis=-1)
    with jax.default_matmul_precision("highest"):
        dense = jnp.tanh(table @ w1 + b1)
        score = dense @ w2 + b2
    return score, dense


if __name__ == "__main__":
    key = jax.random.PRNGKey(0)
    k_emb, k_w1, k_b1, k_w2, k_b2, k_ids, k_starts = jax.random.split(key, 7)

    B, S, T = 2, 12, 8          # batch, wordpiece seq len, unit_num (tokens)
    VOCAB = 100
    H, HID, L = BERT_DIM, HIDDEN_DIM, NUM_LABELS

    # Deterministic synthetic parameters.
    emb_table = jax.random.normal(k_emb, (VOCAB, H), jnp.float32) * 0.02
    w1 = jax.random.normal(k_w1, (4 * H, HID), jnp.float32) * 0.02
    b1 = jax.random.normal(k_b1, (HID,), jnp.float32) * 0.02
    w2 = jax.random.normal(k_w2, (HID, L), jnp.float32) * 0.02
    b2 = jax.random.normal(k_b2, (L,), jnp.float32) * 0.02

    # Deterministic synthetic inputs (token ids, attention mask, start positions).
    var_h = jax.random.randint(k_ids, (B, S), 0, VOCAB)
    attn_mask = jnp.concatenate(
        [jnp.ones((B, S - 2), jnp.int32), jnp.zeros((B, 2), jnp.int32)], axis=1)
    starts = jax.random.randint(k_starts, (B, T), 0, S)

    # One-time model-load preprocessing (NOT on the per-call path).
    w_rc, w_had, b1_p, w2_p, b2_p = jax.tree.map(
        jax.block_until_ready, preprocess_weights(w1, b1, w2, b2))

    # Encoder (stub) + gather in plain JAX glue; hot path (pairwise features +
    # MLP) in the Pallas kernel.
    con_repr = encoder_stub(var_h, attn_mask, starts, emb_table)

    score, dense = phrase_classifier_pallas(con_repr, w_rc, w_had, b1_p, w2_p, b2_p)
    score = jax.block_until_ready(score)
    dense = jax.block_until_ready(dense)

    ref_score, ref_dense = reference_forward(con_repr, w1, b1, w2, b2)
    np.testing.assert_allclose(np.asarray(score), np.asarray(ref_score),
                               rtol=1e-4, atol=1e-4)
    np.testing.assert_allclose(np.asarray(dense), np.asarray(ref_dense),
                               rtol=1e-4, atol=1e-4)

    print("KERNEL_OK")
</pallas_src>

<mosaic_0001>
module attributes {stable_mosaic.version = 11 : i64} {
  func.func @_phrase_kernel(%arg0: i32, %arg1: memref<2x8x768xf32, #tpu.memory_space<vmem>>, %arg2: memref<768x64xf32, #tpu.memory_space<vmem>>, %arg3: memref<768x32xf32, #tpu.memory_space<vmem>>, %arg4: memref<1x32xf32, #tpu.memory_space<vmem>>, %arg5: memref<32x8xf32, #tpu.memory_space<vmem>>, %arg6: memref<1x8xf32, #tpu.memory_space<vmem>>, %arg7: memref<2x64x128xf32, #tpu.memory_space<vmem>>) attributes {dimension_semantics = [#tpu.dimension_semantics<parallel>], iteration_bounds = array<i64: 1>, scalar_prefetch = 0 : i64, scratch_operands = 0 : i64, tpu.core_type = #tpu.core_type<tc>, window_params = [{transform_indices = @transform_0, window_bounds = array<i64: 2, 8, 768>}, {pipeline_mode = #tpu.pipeline_mode<synchronous>, transform_indices = @transform_1, window_bounds = array<i64: 768, 64>}, {pipeline_mode = #tpu.pipeline_mode<synchronous>, transform_indices = @transform_2, window_bounds = array<i64: 768, 32>}, {pipeline_mode = #tpu.pipeline_mode<synchronous>, transform_indices = @transform_3, window_bounds = array<i64: 1, 32>}, {pipeline_mode = #tpu.pipeline_mode<synchronous>, transform_indices = @transform_4, window_bounds = array<i64: 32, 8>}, {pipeline_mode = #tpu.pipeline_mode<synchronous>, transform_indices = @transform_5, window_bounds = array<i64: 1, 8>}, {transform_indices = @transform_6, window_bounds = array<i64: 2, 64, 128>}]} {
    %c0 = arith.constant 0 : index
    %c0_0 = arith.constant 0 : index
    %c0_1 = arith.constant 0 : index
    %0 = vector.load %arg1[%c0, %c0_0, %c0_1] : memref<2x8x768xf32, #tpu.memory_space<vmem>>, vector<2x8x768xf32>
    %1 = vector.shape_cast %0 : vector<2x8x768xf32> to vector<16x768xf32>
    %c0_2 = arith.constant 0 : index
    %c0_3 = arith.constant 0 : index
    %2 = vector.load %arg2[%c0_2, %c0_3] : memref<768x64xf32, #tpu.memory_space<vmem>>, vector<768x64xf32>
    %cst = arith.constant dense<0.000000e+00> : vector<16x64xf32>
    %3 = tpu.matmul %1, %2, %cst {dimension_numbers = #tpu.dot_dimension_numbers<[1], [0], [0], [1], [0, 0, 1, 1], [], []>} : vector<16x768xf32>, vector<768x64xf32>, vector<16x64xf32> -> vector<16x64xf32>
    %4 = vector.extract_strided_slice %3 {offsets = [0, 0], sizes = [16, 32], strides = [1, 1]} : vector<16x64xf32> to vector<16x32xf32>
    %5 = vector.shape_cast %4 : vector<16x32xf32> to vector<2x8x32xf32>
    %6 = vector.shape_cast %5 : vector<2x8x32xf32> to vector<2x8x1x32xf32>
    %7 = vector.extract_strided_slice %3 {offsets = [0, 32], sizes = [16, 32], strides = [1, 1]} : vector<16x64xf32> to vector<16x32xf32>
    %8 = vector.shape_cast %7 : vector<16x32xf32> to vector<2x8x32xf32>
    %9 = vector.shape_cast %8 : vector<2x8x32xf32> to vector<2x1x8x32xf32>
    %10 = vector.shape_cast %0 : vector<2x8x768xf32> to vector<2x8x1x768xf32>
    %11 = vector.shape_cast %0 : vector<2x8x768xf32> to vector<2x1x8x768xf32>
    %12 = vector.broadcast %10 : vector<2x8x1x768xf32> to vector<2x8x8x768xf32>
    %13 = vector.broadcast %11 : vector<2x1x8x768xf32> to vector<2x8x8x768xf32>
    %14 = arith.mulf %12, %13 : vector<2x8x8x768xf32>
    %15 = vector.shape_cast %14 : vector<2x8x8x768xf32> to vector<128x768xf32>
    %c0_4 = arith.constant 0 : index
    %c0_5 = arith.constant 0 : index
    %16 = vector.load %arg3[%c0_4, %c0_5] : memref<768x32xf32, #tpu.memory_space<vmem>>, vector<768x32xf32>
    %cst_6 = arith.constant dense<0.000000e+00> : vector<128x32xf32>
    %17 = tpu.matmul %15, %16, %cst_6 {dimension_numbers = #tpu.dot_dimension_numbers<[1], [0], [0], [1], [0, 0, 1, 1], [], []>} : vector<128x768xf32>, vector<768x32xf32>, vector<128x32xf32> -> vector<128x32xf32>
    %18 = vector.shape_cast %17 : vector<128x32xf32> to vector<2x8x8x32xf32>
    %19 = vector.broadcast %6 : vector<2x8x1x32xf32> to vector<2x8x8x32xf32>
    %20 = arith.addf %18, %19 : vector<2x8x8x32xf32>
    %21 = vector.broadcast %9 : vector<2x1x8x32xf32> to vector<2x8x8x32xf32>
    %22 = arith.addf %20, %21 : vector<2x8x8x32xf32>
    %c0_7 = arith.constant 0 : index
    %c0_8 = arith.constant 0 : index
    %23 = vector.load %arg4[%c0_7, %c0_8] : memref<1x32xf32, #tpu.memory_space<vmem>>, vector<1x32xf32>
    %24 = vector.shape_cast %23 : vector<1x32xf32> to vector<1x1x1x32xf32>
    %25 = vector.broadcast %24 : vector<1x1x1x32xf32> to vector<2x8x8x32xf32>
    %26 = arith.addf %22, %25 : vector<2x8x8x32xf32>
    %27 = math.tanh %26 : vector<2x8x8x32xf32>
    %28 = vector.shape_cast %27 : vector<2x8x8x32xf32> to vector<128x32xf32>
    %c0_9 = arith.constant 0 : index
    %c0_10 = arith.constant 0 : index
    %29 = vector.load %arg5[%c0_9, %c0_10] : memref<32x8xf32, #tpu.memory_space<vmem>>, vector<32x8xf32>
    %cst_11 = arith.constant dense<0.000000e+00> : vector<128x8xf32>
    %30 = tpu.matmul %28, %29, %cst_11 {dimension_numbers = #tpu.dot_dimension_numbers<[1], [0], [0], [1], [0, 0, 1, 1], [], []>} : vector<128x32xf32>, vector<32x8xf32>, vector<128x8xf32> -> vector<128x8xf32>
    %c0_12 = arith.constant 0 : index
    %c0_13 = arith.constant 0 : index
    %31 = vector.load %arg6[%c0_12, %c0_13] : memref<1x8xf32, #tpu.memory_space<vmem>>, vector<1x8xf32>
    %32 = vector.broadcast %31 : vector<1x8xf32> to vector<128x8xf32>
    %33 = arith.addf %30, %32 : vector<128x8xf32>
    %34 = vector.shape_cast %27 : vector<2x8x8x32xf32> to vector<2x64x32xf32>
    %c0_14 = arith.constant 0 : index
    %c0_15 = arith.constant 0 : index
    %c0_16 = arith.constant 0 : index
    %35 = vector.load %arg7[%c0_14, %c0_15, %c0_16] : memref<2x64x128xf32, #tpu.memory_space<vmem>>, vector<2x64x32xf32>
    tpu.vector_store %arg7[%c0_14, %c0_15, %c0_16], %34 {strides = array<i32>} : memref<2x64x128xf32, #tpu.memory_space<vmem>>, vector<2x64x32xf32>,
    %36 = vector.shape_cast %33 : vector<128x8xf32> to vector<2x64x8xf32>
    %c0_17 = arith.constant 0 : index
    %c0_18 = arith.constant 0 : index
    %c32 = arith.constant 32 : index
    %37 = vector.load %arg7[%c0_17, %c0_18, %c32] : memref<2x64x128xf32, #tpu.memory_space<vmem>>, vector<2x64x8xf32>
    tpu.vector_store %arg7[%c0_17, %c0_18, %c32], %36 {strides = array<i32>} : memref<2x64x128xf32, #tpu.memory_space<vmem>>, vector<2x64x8xf32>,
    return
  }
  func.func @transform_0(%arg0: i32) -> (i32, i32, i32) {
    %c0_i32 = arith.constant 0 : i32
    %c0_i32_0 = arith.constant 0 : i32
    %c0_i32_1 = arith.constant 0 : i32
    return %arg0, %c0_i32, %c0_i32_0 : i32, i32, i32
  }
  func.func @transform_1(%arg0: i32) -> (i32, i32) {
    %c0_i32 = arith.constant 0 : i32
    %c0_i32_0 = arith.constant 0 : i32
    %c0_i32_1 = arith.constant 0 : i32
    return %c0_i32, %c0_i32_0 : i32, i32
  }
  func.func @transform_2(%arg0: i32) -> (i32, i32) {
    %c0_i32 = arith.constant 0 : i32
    %c0_i32_0 = arith.constant 0 : i32
    %c0_i32_1 = arith.constant 0 : i32
    return %c0_i32, %c0_i32_0 : i32, i32
  }
  func.func @transform_3(%arg0: i32) -> (i32, i32) {
    %c0_i32 = arith.constant 0 : i32
    %c0_i32_0 = arith.constant 0 : i32
    %c0_i32_1 = arith.constant 0 : i32
    return %c0_i32, %c0_i32_0 : i32, i32
  }
  func.func @transform_4(%arg0: i32) -> (i32, i32) {
    %c0_i32 = arith.constant 0 : i32
    %c0_i32_0 = arith.constant 0 : i32
    %c0_i32_1 = arith.constant 0 : i32
    return %c0_i32, %c0_i32_0 : i32, i32
  }
  func.func @transform_5(%arg0: i32) -> (i32, i32) {
    %c0_i32 = arith.constant 0 : i32
    %c0_i32_0 = arith.constant 0 : i32
    %c0_i32_1 = arith.constant 0 : i32
    return %c0_i32, %c0_i32_0 : i32, i32
  }
  func.func @transform_6(%arg0: i32) -> (i32, i32, i32) {
    %c0_i32 = arith.constant 0 : i32
    %c0_i32_0 = arith.constant 0 : i32
    %c0_i32_1 = arith.constant 0 : i32
    return %arg0, %c0_i32, %c0_i32_0 : i32, i32, i32
  }
}

</mosaic_0001>

<bundles_post_ra>
// kernel: phrase_classifier_pallas.1
= control target key start
LH: loop header
LB: loop body
LE: loop exit
PB: predicated region body
PF: predicated region fallthrough
CT: control target
= control target key end

     0   :  { %s2950_s29 = smov 96   ;;  %vm1979_vm0 = vcmask 261120   ;;  %vm2253_vm1 = vcmask 326912   ;;  %s4604_s1 = inlined_call_operand.vmem [shape: f32[768,64], index: 1, kind: input, shape index: {}]   ;;  %s4605_s0 = inlined_call_operand.vmem [shape: f32[2,8,768], index: 0, kind: input, shape index: {}]   ;;  %s4606_s2 = inlined_call_operand.vmem [shape: f32[768,32], index: 2, kind: input, shape index: {}]   ;;  %s4607_s4 = inlined_call_operand.vmem [shape: f32[32,8], index: 4, kind: input, shape index: {}]   ;;  %s4608_s3 = inlined_call_operand.vmem [shape: f32[1,32], index: 3, kind: input, shape index: {}]   ;;  %s4609_s6 = inlined_call_operand.vmem [shape: f32[2,64,128], index: 6, kind: output, shape index: {}]   ;;  %s4610_s5 = inlined_call_operand.vmem [shape: f32[1,8], index: 5, kind: input, shape index: {}]  }
   0x1   :  { %v51_v0 = vld [vmem:[%s4604_s1 + $0x80] sm:$0xff]  ;;  %v52_v1 = vld [vmem:[%s4604_s1 + $0x88] sm:$0xff]  ;;  %v53_v11 = vld [vmem:[%s4604_s1 + $0x90] sm:$0xff] }
   0x2   :  { %v83_v2 = vld [vmem:[%s4604_s1 + $0x180] sm:$0xff]  ;;  %v2698_v3 = vpack.c.bf16 %v52_v1, %v51_v0  ;;  %v84_v4 = vld [vmem:[%s4604_s1 + $0x188] sm:$0xff]  ;;  %v54_v13 = vld [vmem:[%s4604_s1 + $0x98] sm:$0xff] }
   0x3   :  { %v35_v5 = vld [vmem:[%s4604_s1] sm:$0xff]  ;;  %v36_v6 = vld [vmem:[%s4604_s1 + $0x8] sm:$0xff]  ;;  %v2730_v7 = vpack.c.bf16 %v84_v4, %v83_v2  ;;  %v85_v14 = vld [vmem:[%s4604_s1 + $0x190] sm:$0xff]  ;;  %v2702_v16 = vpack.c.bf16 %v54_v13, %v53_v11 }
   0x4   :  { %v2700_v8 = vpack.c.bf16 %v36_v6, %v35_v5  ;;  %v67_v9 = vld [vmem:[%s4604_s1 + $0x100] sm:$0xff]  ;;  %v68_v10 = vld [vmem:[%s4604_s1 + $0x108] sm:$0xff]  ;;  %2699 = vmatprep.subr.bf16.mxu0 %v2698_v3  ;;  %v86_v15 = vld [vmem:[%s4604_s1 + $0x198] sm:$0xff] }
   0x5   :  { %v2732_v12 = vpack.c.bf16 %v68_v10, %v67_v9  ;;  %2731 = vmatprep.subr.bf16.mxu1 %v2730_v7  ;;  %v2734_v17 = vpack.c.bf16 %v86_v15, %v85_v14  ;;  %v37_v18 = vld [vmem:[%s4604_s1 + $0x10] sm:$0xff]  ;;  %v38_v19 = vld [vmem:[%s4604_s1 + $0x18] sm:$0xff]  ;;  %v55_v23 = vld [vmem:[%s4604_s1 + $0xa0] sm:$0xff] }
   0x6   :  { %2701 = vmatpush3.bf16.msra.mxu0 %v2700_v8  ;;  %v69_v20 = vld [vmem:[%s4604_s1 + $0x110] sm:$0xff]  ;;  %v2704_v21 = vpack.c.bf16 %v38_v19, %v37_v18  ;;  %v70_v22 = vld [vmem:[%s4604_s1 + $0x118] sm:$0xff]  ;;  %v56_v24 = vld [vmem:[%s4604_s1 + $0xa8] sm:$0xff] }
   0x7   :  { %2733 = vmatpush3.bf16.msra.mxu1 %v2732_v12  ;;  %2703 = vmatprep.subr.bf16.mxu0 %v2702_v16  ;;  %v2736_v25 = vpack.c.bf16 %v70_v22, %v69_v20  ;;  %v2706_v26 = vpack.c.bf16 %v56_v24, %v55_v23  ;;  %v87_v27 = vld [vmem:[%s4604_s1 + $0x1a0] sm:$0xff]  ;;  %v88_v28 = vld [vmem:[%s4604_s1 + $0x1a8] sm:$0xff]  ;;  %v57_v35 = vld [vmem:[%s4604_s1 + $0xb0] sm:$0xff] }
   0x8   :  { %2735 = vmatprep.subr.bf16.mxu1 %v2734_v17  ;;  %v39_v29 = vld [vmem:[%s4604_s1 + $0x20] sm:$0xff]  ;;  %v2738_v30 = vpack.c.bf16 %v88_v28, %v87_v27  ;;  %v40_v31 = vld [vmem:[%s4604_s1 + $0x28] sm:$0xff]  ;;  %v58_v36 = vld [vmem:[%s4604_s1 + $0xb8] sm:$0xff] }
   0x9   :  { %v71_v32 = vld [vmem:[%s4604_s1 + $0x120] sm:$0xff]  ;;  %v72_v33 = vld [vmem:[%s4604_s1 + $0x128] sm:$0xff]  ;;  %v2708_v34 = vpack.c.bf16 %v40_v31, %v39_v29  ;;  %v89_v37 = vld [vmem:[%s4604_s1 + $0x1b0] sm:$0xff]  ;;  %v2710_v39 = vpack.c.bf16 %v58_v36, %v57_v35  ;;  %v2949_v36 = vmov 1966171168  }
   0xa   :  { %2705 = vmatpush3.bf16.msra.mxu0 %v2704_v21  ;;  %v2740_v38 = vpack.c.bf16 %v72_v33, %v71_v32  ;;  %v90_v40 = vld [vmem:[%s4604_s1 + $0x1b8] sm:$0xff]  ;;  %v41_v41 = vld [vmem:[%s4604_s1 + $0x30] sm:$0xff]  ;;  %v59_v46 = vld [vmem:[%s4604_s1 + $0xc0] sm:$0xff] }
   0xb   :  { %2737 = vmatpush3.bf16.msra.mxu1 %v2736_v25  ;;  %2707 = vmatprep.subr.bf16.mxu0 %v2706_v26  ;;  %v42_v42 = vld [vmem:[%s4604_s1 + $0x38] sm:$0xff]  ;;  %v2742_v43 = vpack.c.bf16 %v90_v40, %v89_v37  ;;  %v73_v44 = vld [vmem:[%s4604_s1 + $0x130] sm:$0xff]  ;;  %v60_v47 = vld [vmem:[%s4604_s1 + $0xc8] sm:$0xff]  ;;  %v360_v37 = vunpack.c.l.s4 %v2949_v36 }
   0xc   :  { %2739 = vmatprep.subr.bf16.mxu1 %v2738_v30  ;;  %v74_v45 = vld [vmem:[%s4604_s1 + $0x138] sm:$0xff]  ;;  %v91_v48 = vld [vmem:[%s4604_s1 + $0x1c0] sm:$0xff]  ;;  %v92_v49 = vld [vmem:[%s4604_s1 + $0x1c8] sm:$0xff]  ;;  %v2712_v50 = vpack.c.bf16 %v42_v42, %v41_v41  ;;  %v2714_v52 = vpack.c.bf16 %v60_v47, %v59_v46 }
   0xd   :  { %v2744_v51 = vpack.c.bf16 %v74_v45, %v73_v44  ;;  %v43_v53 = vld [vmem:[%s4604_s1 + $0x40] sm:$0xff]  ;;  %v44_v54 = vld [vmem:[%s4604_s1 + $0x48] sm:$0xff]  ;;  %v2746_v56 = vpack.c.bf16 %v92_v49, %v91_v48  ;;  %v61_v58 = vld [vmem:[%s4604_s1 + $0xd0] sm:$0xff] }
   0xe   :  { %2709 = vmatpush3.bf16.msra.mxu0 %v2708_v34  ;;  %v75_v55 = vld [vmem:[%s4604_s1 + $0x140] sm:$0xff]  ;;  %v76_v57 = vld [vmem:[%s4604_s1 + $0x148] sm:$0xff]  ;;  %v62_v59 = vld [vmem:[%s4604_s1 + $0xd8] sm:$0xff]  ;;  %v2716_v62 = vpack.c.bf16 %v44_v54, %v43_v53 }
   0xf   :  { %2741 = vmatpush3.bf16.msra.mxu1 %v2740_v38  ;;  %2711 = vmatprep.subr.bf16.mxu0 %v2710_v39  ;;  %v93_v60 = vld [vmem:[%s4604_s1 + $0x1d0] sm:$0xff]  ;;  %v94_v61 = vld [vmem:[%s4604_s1 + $0x1d8] sm:$0xff]  ;;  %v2748_v63 = vpack.c.bf16 %v76_v57, %v75_v55  ;;  %v2718_v0 = vpack.c.bf16 %v62_v59, %v61_v58  ;;  %v63_v6 = vld [vmem:[%s4604_s1 + $0xe0] sm:$0xff]  ;;  %v362_v38 = vlaneseq }
  0x10   :  { %2743 = vmatprep.subr.bf16.mxu1 %v2742_v43  ;;  %v45_v1 = vld [vmem:[%s4604_s1 + $0x50] sm:$0xff]  ;;  %v46_v2 = vld [vmem:[%s4604_s1 + $0x58] sm:$0xff]  ;;  %v2750_v4 = vpack.c.bf16 %v94_v61, %v93_v60  ;;  %v64_v7 = vld [vmem:[%s4604_s1 + $0xe8] sm:$0xff] }
  0x11   :  { %v77_v3 = vld [vmem:[%s4604_s1 + $0x150] sm:$0xff]  ;;  %v78_v5 = vld [vmem:[%s4604_s1 + $0x158] sm:$0xff]  ;;  %v95_v8 = vld [vmem:[%s4604_s1 + $0x1e0] sm:$0xff]  ;;  %v2720_v10 = vpack.c.bf16 %v46_v2, %v45_v1  ;;  %v2722_v14 = vpack.c.bf16 %v64_v7, %v63_v6 }
  0x12   :  { %2713 = vmatpush3.bf16.msra.mxu0 %v2712_v50  ;;  %v96_v9 = vld [vmem:[%s4604_s1 + $0x1e8] sm:$0xff]  ;;  %v47_v11 = vld [vmem:[%s4604_s1 + $0x60] sm:$0xff]  ;;  %v2752_v13 = vpack.c.bf16 %v78_v5, %v77_v3  ;;  %v3160_v17 = vld [vmem:[%s4605_s0 + $0x18] sm:$0xff] }
  0x13   :  { %2745 = vmatpush3.bf16.msra.mxu1 %v2744_v51  ;;  %2715 = vmatprep.subr.bf16.mxu0 %v2714_v52  ;;  %v48_v12 = vld [vmem:[%s4604_s1 + $0x68] sm:$0xff]  ;;  %v79_v15 = vld [vmem:[%s4604_s1 + $0x160] sm:$0xff]  ;;  %v2754_v18 = vpack.c.bf16 %v96_v9, %v95_v8  ;;  %v65_v20 = vld [vmem:[%s4604_s1 + $0xf0] sm:$0xff]  ;;  %v361_v51 = vunpack.c.0.s8 %v360_v37  ;;  %v3227_v52 = vshrl.u32 %v362_v38, 7 }
  0x14   :  { %2747 = vmatprep.subr.bf16.mxu1 %v2746_v56  ;;  %v3155_v16 = vld [vmem:[%s4605_s0 + $0x8] sm:$0xff]  ;;  %v66_v21 = vld [vmem:[%s4604_s1 + $0xf8] sm:$0xff]  ;;  %v97_v22 = vld [vmem:[%s4604_s1 + $0x1f0] sm:$0xff]  ;;  %270 = vmatprep.mubr.f32.mxu1 %v3160_v17  ;;  %v2724_v24 = vpack.c.bf16 %v48_v12, %v47_v11 }
  0x15   :  { %v80_v19 = vld [vmem:[%s4604_s1 + $0x168] sm:$0xff]  ;;  %195 = vmatprep.mubr.f32.mxu0 %v3155_v16  ;;  %v98_v23 = vld [vmem:[%s4604_s1 + $0x1f8] sm:$0xff]  ;;  %v2726_v26 = vpack.c.bf16 %v66_v21, %v65_v20  ;;  %v49_v27 = vld [vmem:[%s4604_s1 + $0x70] sm:$0xff]  ;;  %v3265_v3 = vsub.s32 %v361_v51, %v3227_v52 }
  0x16   :  { %2717 = vmatpush3.bf16.msra.mxu0 %v2716_v62  ;;  %v2756_v25 = vpack.c.bf16 %v80_v19, %v79_v15  ;;  %v50_v28 = vld [vmem:[%s4604_s1 + $0x78] sm:$0xff]  ;;  %v81_v29 = vld [vmem:[%s4604_s1 + $0x170] sm:$0xff]  ;;  %v2758_v30 = vpack.c.bf16 %v98_v23, %v97_v22  ;;  %v115_v32 = vld [vmem:[%s4604_s1 + $0x280] sm:$0xff] }
  0x17   :  { %2749 = vmatpush3.bf16.msra.mxu1 %v2748_v63  ;;  %2719 = vmatprep.subr.bf16.mxu0 %v2718_v0  ;;  %v82_v31 = vld [vmem:[%s4604_s1 + $0x178] sm:$0xff]  ;;  %v116_v33 = vld [vmem:[%s4604_s1 + $0x288] sm:$0xff]  ;;  %v1296_v34 = vld [vmem:[%s4606_s2 + $0x80] sm:$0xff]  ;;  %v2728_v39 = vpack.c.bf16 %v50_v28, %v49_v27 }
  0x18   :  { %2751 = vmatprep.subr.bf16.mxu1 %v2750_v4  ;;  %v1297_v35 = vld [vmem:[%s4606_s2 + $0x88] sm:$0xff]  ;;  %v2760_v40 = vpack.c.bf16 %v82_v31, %v81_v29  ;;  %v2762_v41 = vpack.c.bf16 %v116_v33, %v115_v32  ;;  %v99_v42 = vld [vmem:[%s4604_s1 + $0x200] sm:$0xff]  ;;  %v117_v47 = vld [vmem:[%s4604_s1 + $0x290] sm:$0xff] }
  0x19   :  { %v100_v43 = vld [vmem:[%s4604_s1 + $0x208] sm:$0xff]  ;;  %v1280_v44 = vld [vmem:[%s4606_s2] sm:$0xff]  ;;  %v2794_v45 = vpack.c.bf16 %v1297_v35, %v1296_v34  ;;  %v118_v48 = vld [vmem:[%s4604_s1 + $0x298] sm:$0xff] }
  0x1a   :  { %2721 = vmatpush3.bf16.msra.mxu0 %v2720_v10  ;;  %v1281_v46 = vld [vmem:[%s4606_s2 + $0x8] sm:$0xff]  ;;  %v1298_v49 = vld [vmem:[%s4606_s2 + $0x90] sm:$0xff]  ;;  %v1299_v50 = vld [vmem:[%s4606_s2 + $0x98] sm:$0xff]  ;;  %v2764_v55 = vpack.c.bf16 %v100_v43, %v99_v42  ;;  %v2766_v57 = vpack.c.bf16 %v118_v48, %v117_v47 }
  0x1b   :  { %2753 = vmatpush3.bf16.msra.mxu1 %v2752_v13  ;;  %2723 = vmatprep.subr.bf16.mxu0 %v2722_v14  ;;  %v3232_v53 = vld [vmem:[%s4605_s0] sm:$0xff]  ;;  %v3237_v54 = vld [vmem:[%s4605_s0 + $0x10] sm:$0xff]  ;;  %v2796_v56 = vpack.c.bf16 %v1281_v46, %v1280_v44  ;;  %v102_v59 = vld [vmem:[%s4604_s1 + $0x218] sm:$0xff]  ;;  %v2798_v61 = vpack.c.bf16 %v1299_v50, %v1298_v49 }
  0x1c   :  { %2755 = vmatprep.subr.bf16.mxu1 %v2754_v18  ;;  %v101_v58 = vld [vmem:[%s4604_s1 + $0x210] sm:$0xff]  ;;  %v1283_v62 = vld [vmem:[%s4606_s2 + $0x18] sm:$0xff]  ;;  %v119_v63 = vld [vmem:[%s4604_s1 + $0x2a0] sm:$0xff]  ;;  %v468_v5 = vcombine.low %v3232_v53, %v3155_v16  ;;  %v470_v6 = vcombine.low %v3237_v54, %v3160_v17 }
  0x1d   :  { %v1282_v60 = vld [vmem:[%s4606_s2 + $0x10] sm:$0xff]  ;;  %v120_v0 = vld [vmem:[%s4604_s1 + $0x2a8] sm:$0xff]  ;;  %v1300_v1 = vld [vmem:[%s4606_s2 + $0xa0] sm:$0xff]  ;;  %v2768_v4 = vpack.c.bf16 %v102_v59, %v101_v58 }
  0x1e   :  { %2725 = vmatpush3.bf16.msra.mxu0 %v2724_v24  ;;  %v1301_v2 = vld [vmem:[%s4606_s2 + $0xa8] sm:$0xff]  ;;  %v2800_v7 = vpack.c.bf16 %v1283_v62, %v1282_v60  ;;  %v2770_v8 = vpack.c.bf16 %v120_v0, %v119_v63  ;;  %v103_v9 = vld [vmem:[%s4604_s1 + $0x220] sm:$0xff]  ;;  %v121_v14 = vld [vmem:[%s4604_s1 + $0x2b0] sm:$0xff] }
  0x1f   :  { %2757 = vmatpush3.bf16.msra.mxu1 %v2756_v25  ;;  %2727 = vmatprep.subr.bf16.mxu0 %v2726_v26  ;;  %v104_v10 = vld [vmem:[%s4604_s1 + $0x228] sm:$0xff]  ;;  %v1284_v11 = vld [vmem:[%s4606_s2 + $0x20] sm:$0xff]  ;;  %v2802_v12 = vpack.c.bf16 %v1301_v2, %v1300_v1  ;;  %v122_v15 = vld [vmem:[%s4604_s1 + $0x2b8] sm:$0xff]  ;;  %v3309_v25 = vrot.slane %v468_v5, %v3265_v3  ;;  %v3312_v26 = vrot.slane %v470_v6, %v3265_v3 }
  0x20   :  { %2759 = vmatprep.subr.bf16.mxu1 %v2758_v30  ;;  %v1285_v13 = vld [vmem:[%s4606_s2 + $0x28] sm:$0xff]  ;;  %v1302_v18 = vld [vmem:[%s4606_s2 + $0xb0] sm:$0xff]  ;;  %v1303_v19 = vld [vmem:[%s4606_s2 + $0xb8] sm:$0xff]  ;;  %v2772_v21 = vpack.c.bf16 %v104_v10, %v103_v9  ;;  %v2774_v28 = vpack.c.bf16 %v122_v15, %v121_v14 }
  0x21   :  { %v105_v20 = vld [vmem:[%s4604_s1 + $0x230] sm:$0xff]  ;;  %v106_v22 = vld [vmem:[%s4604_s1 + $0x238] sm:$0xff]  ;;  %v2804_v27 = vpack.c.bf16 %v1285_v13, %v1284_v11  ;;  %v123_v29 = vld [vmem:[%s4604_s1 + $0x2c0] sm:$0xff]  ;;  %v2806_v32 = vpack.c.bf16 %v1303_v19, %v1302_v18  ;;  %v517_v60 = vcombine.high %v3309_v25, %v3312_v26  ;;  %v471_v13 = vcombine.high %v3237_v54, %v3160_v17 }
  0x22   :  { %2729 = vmatpush3.bf16.msra.mxu0 %v2728_v39  ;;  %v1286_v23 = vld [vmem:[%s4606_s2 + $0x30] sm:$0xff]  ;;  %v1287_v24 = vld [vmem:[%s4606_s2 + $0x38] sm:$0xff]  ;;  %v3325_v31 = vld [vmem:[%s4605_s0 + $0x48] sm:$0xff]  ;;  %v2776_v38 = vpack.c.bf16 %v106_v22, %v105_v20 }
  0x23   :  { %2761 = vmatpush3.bf16.msra.mxu1 %v2760_v40  ;;  %2763 = vmatprep.subr.bf16.mxu0 %v2762_v41  ;;  %v3320_v30 = vld [vmem:[%s4605_s0 + $0x38] sm:$0xff]  ;;  %v124_v33 = vld [vmem:[%s4604_s1 + $0x2c8] sm:$0xff]  ;;  %v3334_v34 = vld [vmem:[%s4605_s0 + $0x30] sm:$0xff]  ;;  %v516_v41 = vcombine.low %v3309_v25, %v3312_v26  ;;  %v2808_v42 = vpack.c.bf16 %v1287_v24, %v1286_v23  ;;  %v3434_v18 = vrot.slane %v517_v60, %v3265_v3 }
  0x24   :  { %2795 = vmatprep.subr.bf16.mxu1 %v2794_v45  ;;  %v3339_v35 = vld [vmem:[%s4605_s0 + $0x40] sm:$0xff]  ;;  %v1305_v37 = vld [vmem:[%s4606_s2 + $0xc8] sm:$0xff]  ;;  %v2778_v43 = vpack.c.bf16 %v124_v33, %v123_v29  ;;  %v125_v49 = vld [vmem:[%s4604_s1 + $0x2d0] sm:$0xff] }
  0x25   :  { %196 = vmatmul.mubr.f32.vlgmr.msra.gmra.mrb[0].mxu0 %v3232_v53  ;;  %v1304_v36 = vld [vmem:[%s4606_s2 + $0xc0] sm:$0xff]  ;;  %v108_v40 = vld [vmem:[%s4604_s1 + $0x248] sm:$0xff]  ;;  %v126_v50 = vld [vmem:[%s4604_s1 + $0x2d8] sm:$0xff]  ;;  %v3391_v59 = vrot.slane %v516_v41, %v3265_v3 }
  0x26   :  { %271 = vmatmul.mubr.f32.vlgmr.msra.gmra.mrb[0].mxu1 %v3237_v54  ;;  %2765 = vmatpush3.bf16.msra.mxu0 %v2764_v55  ;;  %v107_v39 = vld [vmem:[%s4604_s1 + $0x240] sm:$0xff]  ;;  %v3364_v45 = vld [vmem:[%s4605_s0 + $0x28] sm:$0xff]  ;;  %v2810_v47 = vpack.c.bf16 %v1305_v37, %v1304_v36  ;;  %v1306_v55 = vld [vmem:[%s4606_s2 + $0xd0] sm:$0xff]  ;;  %v2782_v62 = vpack.c.bf16 %v126_v50, %v125_v49  ;;  %v501_v37 = vrot.slane %v471_v13, %v3265_v3 }
  0x27   :  { %2797 = vmatpush3.bf16.msra.mxu1 %v2796_v56  ;;  %2767 = vmatprep.subr.bf16.mxu0 %v2766_v57  ;;  %v1288_v44 = vld [vmem:[%s4606_s2 + $0x40] sm:$0xff]  ;;  %v1289_v48 = vld [vmem:[%s4606_s2 + $0x48] sm:$0xff]  ;;  %v1307_v56 = vld [vmem:[%s4606_s2 + $0xd8] sm:$0xff]  ;;  %v2780_v57 = vpack.c.bf16 %v108_v40, %v107_v39  ;;  %v3471_v40 = vsub.s32 0, %v3227_v52 }
  0x28   :  { %2799 = vmatprep.subr.bf16.mxu1 %v2798_v61  ;;  %200 = vmatprep.mubr.f32.mxu0 %v3320_v30  ;;  %v3369_v46 = vld [vmem:[%s4605_s0 + $0x20] sm:$0xff]  ;;  %v2812_v61 = vpack.c.bf16 %v1289_v48, %v1288_v44  ;;  %v109_v63 = vld [vmem:[%s4604_s1 + $0x250] sm:$0xff]  ;;  %v110_v0 = vld [vmem:[%s4604_s1 + $0x258] sm:$0xff]  ;;  %v2814_v2 = vpack.c.bf16 %v1307_v56, %v1306_v55 }
  0x29   :  { %275 = vmatprep.mubr.f32.mxu1 %v3325_v31  ;;  %201 = vmatmul.mubr.f32.gmra.mrb[2].mxu0 %v3334_v34  ;;  %v472_v51 = vcombine.low %v3369_v46, %v3364_v45  ;;  %v1290_v1 = vld [vmem:[%s4606_s2 + $0x50] sm:$0xff]  ;;  %v127_v5 = vld [vmem:[%s4604_s1 + $0x2e0] sm:$0xff]  ;;  %v128_v6 = vld [vmem:[%s4604_s1 + $0x2e8] sm:$0xff]  ;;  %v2784_v14 = vpack.c.bf16 %v110_v0, %v109_v63 }
  0x2a   :  { %2769 = vmatpush3.bf16.msra.mxu0 %v2768_v4  ;;  %276 = vmatmul.mubr.f32.gmra.mrb[2].mxu1 %v3339_v35  ;;  %v1291_v4 = vld [vmem:[%s4606_s2 + $0x58] sm:$0xff]  ;;  %v1308_v10 = vld [vmem:[%s4606_s2 + $0xe0] sm:$0xff]  ;;  %v1309_v11 = vld [vmem:[%s4606_s2 + $0xe8] sm:$0xff]  ;;  %v2786_v20 = vpack.c.bf16 %v128_v6, %v127_v5 }
  0x2b   :  { %2801 = vmatpush3.bf16.msra.mxu1 %v2800_v7  ;;  %2771 = vmatprep.subr.bf16.mxu0 %v2770_v8  ;;  %v508_v58 = vrot.slane %v472_v51, %v3265_v3  ;;  %v3417_v8 = vsub.s32 1, %v3227_v52  ;;  %v2816_v19 = vpack.c.bf16 %v1291_v4, %v1290_v1  ;;  %v112_v22 = vld [vmem:[%s4604_s1 + $0x268] sm:$0xff]  ;;  %v1292_v23 = vld [vmem:[%s4606_s2 + $0x60] sm:$0xff]  ;;  %v2818_v25 = vpack.c.bf16 %v1309_v11, %v1308_v10  ;;  %v1311_v33 = vld [vmem:[%s4606_s2 + $0xf8] sm:$0xff] }
  0x2c   :  { %2803 = vmatprep.subr.bf16.mxu1 %v2802_v12  ;;  %345 = vmatprep.mubr.f32.mxu0 %v3364_v45  ;;  %v469_v12 = vcombine.high %v3232_v53, %v3155_v16  ;;  %v1293_v26 = vld [vmem:[%s4606_s2 + $0x68] sm:$0xff]  ;;  %v113_v39 = vld [vmem:[%s4604_s1 + $0x270] sm:$0xff]  ;;  %v1295_v49 = vld [vmem:[%s4606_s2 + $0x78] sm:$0xff] }
  0x2d   :  { %v3414_v7 = vrot.slane %v508_v58, %v3265_v3  ;;  %v520_v9 = vcombine.high %v508_v58, %v508_v58  ;;  %v1294_v48 = vld [vmem:[%s4606_s2 + $0x70] sm:$0xff]  ;;  %v1328_v55 = vld [vmem:[%s4606_s2 + $0x180] sm:$0xff]  ;;  %v1329_v56 = vld [vmem:[%s4606_s2 + $0x188] sm:$0xff]  ;;  %v588_v58 = vcombine.low %v3339_v35, %v3325_v31 }
  0x2e   :  { %2773 = vmatpush3.bf16.msra.mxu0 %v2772_v21  ;;  %v111_v21 = vld [vmem:[%s4604_s1 + $0x260] sm:$0xff]  ;;  %v487_v36 = vrot.slane %v469_v12, %v3265_v3  ;;  %v1361_v63 = vld [vmem:[%s4606_s2 + $0x288] sm:$0xff]  ;;  %v2824_v1 = vpack.c.bf16 %v1295_v49, %v1294_v48  ;;  %v1330_v11 = vld [vmem:[%s4606_s2 + $0x190] sm:$0xff] }
  0x2f   :  { %2805 = vmatpush3.bf16.msra.mxu1 %v2804_v27  ;;  %2775 = vmatprep.subr.bf16.mxu0 %v2774_v28  ;;  %v3431_v15 = vcombine.low %v3391_v59, %v3414_v7  ;;  %v3446_v24 = vrot.slane %v520_v9, %v3265_v3  ;;  %v129_v27 = vld [vmem:[%s4604_s1 + $0x2f0] sm:$0xff]  ;;  %v130_v28 = vld [vmem:[%s4604_s1 + $0x2f8] sm:$0xff]  ;;  %v1312_v4 = vld [vmem:[%s4606_s2 + $0x100] sm:$0xff]  ;;  %v2826_v9 = vpack.c.bf16 %v1329_v56, %v1328_v55 }
  0x30   :  { %2807 = vmatprep.subr.bf16.mxu1 %v2806_v32  ;;  %v1310_v32 = vld [vmem:[%s4606_s2 + $0xf0] sm:$0xff]  ;;  %v2790_v44 = vpack.c.bf16 %v130_v28, %v129_v27  ;;  %v518_v60 = vcombine.low %v487_v36, %v501_v37  ;;  %v1313_v5 = vld [vmem:[%s4606_s2 + $0x108] sm:$0xff]  ;;  %v3521_v12 = vcombine.high %v3391_v59, %v3414_v7  ;;  %v1331_v13 = vld [vmem:[%s4606_s2 + $0x198] sm:$0xff]  ;;  %v3540_v59 = vrot.slane %v588_v58, %v3265_v3 }
  0x31   :  { %v711_v29 = vrot.slane %v3431_v15, %v3417_v8  ;;  %v3487_v50 = vcombine.low %v3434_v18, %v3446_v24  ;;  %v2822_v51 = vpack.c.bf16 %v1311_v33, %v1310_v32  ;;  %v2828_v7 = vpack.c.bf16 %v1313_v5, %v1312_v4  ;;  %v1345_v27 = vld [vmem:[%s4606_s2 + $0x208] sm:$0xff]  ;;  %v3597_v49 = vld [vmem:[%s4606_s2 + $0x120] sm:$0xff]  ;;  %v3615_v58 = vld [vmem:[%s4606_s2 + $0x1b0] sm:$0xff] }
  0x32   :  { %2777 = vmatpush3.bf16.msra.mxu0 %v2776_v38  ;;  %v2788_v38 = vpack.c.bf16 %v112_v22, %v111_v21  ;;  %v3545_v22 = vld [vmem:[%s4606_s2 + $0x1a0] sm:$0xff]  ;;  %v3560_v28 = vsub.s32 3, %v3227_v52  ;;  %v1333_v33 = vld [vmem:[%s4606_s2 + $0x1a8] sm:$0xff]  ;;  %v2830_v48 = vpack.c.bf16 %v1331_v13, %v1330_v11 }
  0x33   :  { %2809 = vmatpush3.bf16.msra.mxu1 %v2808_v42  ;;  %2779 = vmatprep.subr.bf16.mxu0 %v2778_v43  ;;  %v1185_v41 = vmul.f32 %v711_v29, %v3155_v16  ;;  %v473_v42 = vcombine.high %v3369_v46, %v3364_v45  ;;  %v2820_v43 = vpack.c.bf16 %v1293_v26, %v1292_v23  ;;  %v1344_v26 = vld [vmem:[%s4606_s2 + $0x200] sm:$0xff] }
  0x34   :  { %2811 = vmatprep.subr.bf16.mxu1 %v2810_v47  ;;  %v114_v47 = vld [vmem:[%s4604_s1 + $0x278] sm:$0xff]  ;;  %v735_v10 = vrot.slane %v3487_v50, %v3417_v8  ;;  %v3548_v23 = vrot.slane %v518_v60, %v3265_v3  ;;  %v731_v32 = vrot.slane %v3487_v50, %v3471_v40  ;;  %v2860_v55 = vpack.c.bf16 %v1345_v27, %v1344_v26  ;;  %v1364_v5 = vld [vmem:[%s4606_s2 + $0x2a0] sm:$0xff]  ;;  %v1349_v27 = vld [vmem:[%s4606_s2 + $0x228] sm:$0xff]  ;;  %s2951_s1 = smov 32  }
  0x35   :  { %1440 = vmatprep.mubr.f32.mxu1 %v1185_v41  ;;  %v2792_v0 = vpack.c.bf16 %v114_v47, %v113_v39  ;;  %v515_v6 = vrot.slane %v473_v42, %v3265_v3  ;;  %v1363_v39 = vld [vmem:[%s4606_s2 + $0x298] sm:$0xff]  ;;  %v3592_v47 = vld [vmem:[%s4605_s0 + $0x50] sm:$0xff]  ;;  %v1348_v26 = vld [vmem:[%s4606_s2 + $0x220] sm:$0xff] }
  0x36   :  { %2781 = vmatpush3.bf16.msra.mxu0 %v2780_v57  ;;  %v586_v57 = vcombine.low %v3334_v34, %v3320_v30  ;;  %v3580_v41 = vld [vmem:[%s4605_s0 + $0x58] sm:$0xff]  ;;  %v1191_v42 = vmul.f32 %v735_v10, %v3155_v16 }
  0x37   :  { %2813 = vmatpush3.bf16.msra.mxu1 %v2812_v61  ;;  %2783 = vmatprep.subr.bf16.mxu0 %v2782_v62  ;;  %v519_v61 = vcombine.high %v487_v36, %v501_v37  ;;  %v1360_v62 = vld [vmem:[%s4606_s2 + $0x280] sm:$0xff]  ;;  %v3569_v36 = vrot.slane %v515_v6, %v3265_v3  ;;  %v521_v37 = vcombine.high %v515_v6, %v515_v6  ;;  %v1365_v6 = vld [vmem:[%s4606_s2 + $0x2a8] sm:$0xff] }
  0x38   :  { %2815 = vmatprep.subr.bf16.mxu1 %v2814_v2  ;;  %v707_v2 = vrot.slane %v3431_v15, %v3471_v40  ;;  %v3537_v21 = vrot.slane %v586_v57, %v3265_v3  ;;  %v2834_v57 = vpack.c.bf16 %v1333_v33, %v3545_v22  ;;  %v2866_v22 = vpack.c.bf16 %v1365_v6, %v1364_v5  ;;  %v1318_v33 = vld [vmem:[%s4606_s2 + $0x130] sm:$0xff]  ;;  %v1351_v5 = vld [vmem:[%s4606_s2 + $0x238] sm:$0xff] }
  0x39   :  { %v3632_v4 = vrot.slane %v521_v37, %v3265_v3  ;;  %v3646_v11 = vcombine.low %v3548_v23, %v3569_v36 }
  0x3a   :  { %2785 = vmatpush3.bf16.msra.mxu0 %v2784_v14  ;;  %v3529_v14 = vld [vmem:[%s4606_s2 + $0x110] sm:$0xff]  ;;  %v1184_v29 = vmul.f32 %v707_v2, %v3232_v53  ;;  %v1335_v2 = vld [vmem:[%s4606_s2 + $0x1b8] sm:$0xff] }
  0x3b   :  { %2817 = vmatpush3.bf16.msra.mxu1 %v2816_v19  ;;  %2787 = vmatprep.subr.bf16.mxu0 %v2786_v20  ;;  %v3534_v19 = vld [vmem:[%s4606_s2 + $0x118] sm:$0xff]  ;;  %v2858_v20 = vpack.c.bf16 %v1361_v63, %v1360_v62  ;;  %v719_v63 = vrot.slane %v3431_v15, %v3560_v28 }
  0x3c   :  { %2819 = vmatprep.subr.bf16.mxu1 %v2818_v25  ;;  %v3551_v25 = vrot.slane %v519_v61, %v3265_v3  ;;  %v2832_v56 = vpack.c.bf16 %v3534_v19, %v3529_v14  ;;  %v1346_v61 = vld [vmem:[%s4606_s2 + $0x210] sm:$0xff]  ;;  %v1347_v62 = vld [vmem:[%s4606_s2 + $0x218] sm:$0xff]  ;;  %v590_v14 = vcombine.low %v3592_v47, %v3580_v41 }
  0x3d   :  { %v2864_v13 = vpack.c.bf16 %v1347_v62, %v1346_v61  ;;  %v1187_v19 = vmul.f32 %v719_v63, %v3160_v17  ;;  %v3707_v61 = vld [vmem:[%s4606_s2 + $0x1d8] sm:$0xff]  ;;  %v3711_v62 = vcombine.high %v3548_v23, %v3569_v36 }
  0x3e   :  { %2789 = vmatpush3.bf16.msra.mxu0 %v2788_v38  ;;  %v1362_v38 = vld [vmem:[%s4606_s2 + $0x290] sm:$0xff]  ;;  %v3669_v37 = vcombine.low %v3551_v25, %v3632_v4  ;;  %v3714_v63 = vrot.slane %v590_v14, %v3265_v3 }
  0x3f   :  { %2821 = vmatpush3.bf16.msra.mxu1 %v2820_v43  ;;  %2791 = vmatprep.subr.bf16.mxu0 %v2790_v44  ;;  %v759_v43 = vrot.slane %v3521_v12, %v3417_v8  ;;  %v3587_v44 = vcombine.high %v3434_v18, %v3446_v24  ;;  %v634_v18 = vcombine.low %v3537_v21, %v3540_v59  ;;  %v3749_v14 = vld [vmem:[%s4606_s2 + $0x150] sm:$0xff] }
  0x40   :  { %2823 = vmatprep.subr.bf16.mxu1 %v2822_v51  ;;  %v3602_v51 = vld [vmem:[%s4606_s2 + $0x128] sm:$0xff]  ;;  %v587_v24 = vcombine.high %v3334_v34, %v3320_v30  ;;  %v2862_v60 = vpack.c.bf16 %v1363_v39, %v1362_v38  ;;  %v1319_v39 = vld [vmem:[%s4606_s2 + $0x138] sm:$0xff] }
  0x41   :  { %v783_v10 = vrot.slane %v3587_v44, %v3417_v8 }
  0x42   :  { %2793 = vmatpush3.bf16.msra.mxu0 %v2792_v0  ;;  %v1190_v0 = vmul.f32 %v731_v32, %v3232_v53  ;;  %v779_v32 = vrot.slane %v3587_v44, %v3471_v40  ;;  %v3729_v23 = vrot.slane %v587_v24, %v3265_v3 }
  0x43   :  { %2825 = vmatpush3.bf16.msra.mxu1 %v2824_v1  ;;  %2827 = vmatprep.subr.bf16.mxu0 %v2826_v9  ;;  %v755_v1 = vrot.slane %v3521_v12, %v3471_v40  ;;  %v1197_v9 = vmul.f32 %v759_v43, %v3155_v16  ;;  %v1203_v38 = vmul.f32 %v783_v10, %v3155_v16 }
  0x44   :  { %2859 = vmatprep.subr.bf16.mxu1 %v2858_v20  ;;  %v2836_v20 = vpack.c.bf16 %v3602_v51, %v3597_v49  ;;  %v803_v43 = vrot.slane %v3646_v11, %v3471_v40  ;;  %v1337_v49 = vld [vmem:[%s4606_s2 + $0x1c8] sm:$0xff]  ;;  %v3688_v51 = vld [vmem:[%s4606_s2 + $0x140] sm:$0xff]  ;;  %v1202_v36 = vmul.f32 %v779_v32, %v3232_v53 }
  0x45   :  { %346 = vmatmul.mubr.f32.vlgmr.msra.gmra.mrb[4].mxu0 %v3369_v46 }
  0x46   :  { %1441 = vmatmul.mubr.f32.vlgmr.msra.gmra.mrb[4].mxu1 %v1184_v29  ;;  %2829 = vmatpush3.bf16.msra.mxu0 %v2828_v7  ;;  %v2838_v7 = vpack.c.bf16 %v1335_v2, %v3615_v58  ;;  %v1196_v29 = vmul.f32 %v755_v1, %v3232_v53  ;;  %v2868_v58 = vpack.c.bf16 %v1349_v27, %v1348_v26  ;;  %v1350_v2 = vld [vmem:[%s4606_s2 + $0x230] sm:$0xff]  ;;  %v3765_v26 = vld [vmem:[%s4606_s2 + $0x1e0] sm:$0xff] }
  0x47   :  { %350 = vmatprep.mubr.f32.mxu0 %v3580_v41  ;;  %1445 = vmatprep.mubr.f32.mxu1 %v1191_v42  ;;  %v807_v42 = vrot.slane %v3646_v11, %v3417_v8  ;;  %v831_v1 = vrot.slane %v3669_v37, %v3417_v8  ;;  %v1208_v6 = vmul.f32 %v803_v43, %v3232_v53  ;;  %v1352_v43 = vld [vmem:[%s4606_s2 + $0x240] sm:$0xff] }
  0x48   :  { %2831 = vmatprep.subr.bf16.mxu0 %v2830_v48  ;;  %2861 = vmatpush3.bf16.msra.mxu1 %v2860_v55  ;;  %v1336_v48 = vld [vmem:[%s4606_s2 + $0x1c0] sm:$0xff]  ;;  %v3693_v55 = vld [vmem:[%s4606_s2 + $0x148] sm:$0xff]  ;;  %v2872_v27 = vpack.c.bf16 %v1351_v5, %v1350_v2  ;;  %v1371_v2 = vld [vmem:[%s4606_s2 + $0x2d8] sm:$0xff] }
  0x49   :  { %351 = vmatmul.mubr.f32.gmra.mrb[6].mxu0 %v3592_v47  ;;  %2863 = vmatprep.subr.bf16.mxu1 %v2862_v60  ;;  %v589_v60 = vcombine.high %v3339_v35, %v3325_v31  ;;  %v1209_v24 = vmul.f32 %v807_v42, %v3155_v16  ;;  %v2844_v10 = vpack.c.bf16 %v3693_v55, %v3688_v51 }
  0x4a   :  { %1446 = vmatmul.mubr.f32.gmra.mrb[6].mxu1 %v1190_v0  ;;  %2833 = vmatpush3.bf16.msra.mxu0 %v2832_v56  ;;  %v3698_v56 = vld [vmem:[%s4606_s2 + $0x1d0] sm:$0xff]  ;;  %v3717_v0 = vrot.slane %v634_v18, %v3265_v3  ;;  %v2840_v18 = vpack.c.bf16 %v1319_v39, %v1318_v33  ;;  %v1215_v33 = vmul.f32 %v831_v1, %v3155_v16  ;;  %v1341_v39 = vld [vmem:[%s4606_s2 + $0x1e8] sm:$0xff] }
  0x4b   :  { %1450 = vmatprep.mubr.f32.mxu1 %v1197_v9  ;;  %2835 = vmatprep.subr.bf16.mxu0 %v2834_v57  ;;  %v635_v57 = vcombine.high %v3537_v21, %v3540_v59  ;;  %v1366_v21 = vld [vmem:[%s4606_s2 + $0x2b0] sm:$0xff]  ;;  %v1367_v59 = vld [vmem:[%s4606_s2 + $0x2b8] sm:$0xff]  ;;  %v2842_v9 = vpack.c.bf16 %v1337_v49, %v1336_v48  ;;  %v3770_v32 = vrot.slane %v589_v60, %v3265_v3  ;;  %v1353_v48 = vld [vmem:[%s4606_s2 + $0x248] sm:$0xff] }
  0x4c   :  { %2865 = vmatpush3.bf16.msra.mxu1 %v2864_v13  ;;  %1585 = vmatprep.mubr.f32.mxu0 %v1187_v19  ;;  %v2846_v13 = vpack.c.bf16 %v3707_v61, %v3698_v56  ;;  %v3754_v19 = vld [vmem:[%s4606_s2 + $0x158] sm:$0xff]  ;;  %v3786_v42 = vrot.slane %v3714_v63, %v3265_v3  ;;  %v638_v49 = vcombine.high %v3714_v63, %v3714_v63  ;;  %v3809_v60 = vld [vmem:[%s4606_s2 + $0x168] sm:$0xff] }
  0x4d   :  { %2867 = vmatprep.subr.bf16.mxu1 %v2866_v22  ;;  %v855_v22 = vrot.slane %v3711_v62, %v3417_v8  ;;  %v636_v55 = vcombine.low %v3729_v23, %v3770_v32  ;;  %v2848_v56 = vpack.c.bf16 %v3754_v19, %v3749_v14  ;;  %v3812_v61 = vrot.slane %v635_v57, %v3265_v3  ;;  %v1370_v57 = vld [vmem:[%s4606_s2 + $0x2d0] sm:$0xff] }
  0x4e   :  { %1451 = vmatmul.mubr.f32.gmra.mrb[8].mxu1 %v1196_v29  ;;  %2837 = vmatpush3.bf16.msra.mxu0 %v2836_v20  ;;  %v3758_v20 = vcombine.high %v3551_v25, %v3632_v4  ;;  %v591_v29 = vcombine.high %v3592_v47, %v3580_v41  ;;  %v1368_v25 = vld [vmem:[%s4606_s2 + $0x2c0] sm:$0xff]  ;;  %v1369_v4 = vld [vmem:[%s4606_s2 + $0x2c8] sm:$0xff]  ;;  %v2876_v1 = vpack.c.bf16 %v1353_v48, %v1352_v43  ;;  %v1354_v19 = vld [vmem:[%s4606_s2 + $0x250] sm:$0xff] }
  0x4f   :  { %1455 = vmatprep.mubr.f32.mxu1 %v1203_v38  ;;  %2839 = vmatprep.subr.bf16.mxu0 %v2838_v7  ;;  %v2870_v7 = vpack.c.bf16 %v1367_v59, %v1366_v21  ;;  %v827_v38 = vrot.slane %v3669_v37, %v3471_v40  ;;  %v2874_v63 = vpack.c.bf16 %v1369_v4, %v1368_v25  ;;  %v1372_v43 = vld [vmem:[%s4606_s2 + $0x2e0] sm:$0xff] }
  0x50   :  { %2869 = vmatpush3.bf16.msra.mxu1 %v2868_v58  ;;  %v633_v51 = vrot.slane %v591_v29, %v3265_v3  ;;  %v3804_v58 = vld [vmem:[%s4606_s2 + $0x160] sm:$0xff]  ;;  %v851_v21 = vrot.slane %v3711_v62, %v3471_v40  ;;  %v2850_v59 = vpack.c.bf16 %v1341_v39, %v3765_v26  ;;  %v3852_v26 = vsub.s32 2, %v3227_v52  ;;  %v1326_v39 = vld [vmem:[%s4606_s2 + $0x170] sm:$0xff] }
  0x51   :  { %2871 = vmatprep.subr.bf16.mxu1 %v2870_v7  ;;  %v1214_v5 = vmul.f32 %v827_v38, %v3232_v53  ;;  %v3849_v7 = vcombine.low %v3717_v0, %v3786_v42  ;;  %v637_v29 = vcombine.high %v3729_v23, %v3770_v32  ;;  %v2878_v4 = vpack.c.bf16 %v1371_v2, %v1370_v57  ;;  %v1327_v23 = vld [vmem:[%s4606_s2 + $0x178] sm:$0xff]  ;;  %v1374_v57 = vld [vmem:[%s4606_s2 + $0x2f0] sm:$0xff] }
  0x52   :  { %1456 = vmatmul.mubr.f32.gmra.mrb[10].mxu1 %v1202_v36  ;;  %2841 = vmatpush3.bf16.msra.mxu0 %v2840_v18  ;;  %v879_v36 = vrot.slane %v3758_v20, %v3417_v8  ;;  %v3822_v18 = vld [vmem:[%s4606_s2 + $0x1f0] sm:$0xff]  ;;  %v3838_v14 = vrot.slane %v633_v51, %v3265_v3  ;;  %v639_v25 = vcombine.high %v633_v51, %v633_v51  ;;  %v1375_v2 = vld [vmem:[%s4606_s2 + $0x2f8] sm:$0xff] }
  0x53   :  { %1460 = vmatprep.mubr.f32.mxu1 %v1209_v24  ;;  %2843 = vmatprep.subr.bf16.mxu0 %v2842_v9  ;;  %v1343_v24 = vld [vmem:[%s4606_s2 + $0x1f8] sm:$0xff]  ;;  %v3835_v9 = vrot.slane %v636_v55, %v3265_v3  ;;  %v1220_v48 = vmul.f32 %v851_v21, %v3232_v53  ;;  %v1373_v55 = vld [vmem:[%s4606_s2 + $0x2e8] sm:$0xff]  ;;  %v3899_v21 = vsub.s32 5, %v3227_v52 }
  0x54   :  { %2873 = vmatpush3.bf16.msra.mxu1 %v2872_v27  ;;  %v3855_v27 = vrot.slane %v638_v49, %v3265_v3  ;;  %v2854_v38 = vpack.c.bf16 %v1343_v24, %v3822_v18  ;;  %v1227_v49 = vmul.f32 %v879_v36, %v3155_v16  ;;  %v743_v36 = vrot.slane %v3487_v50, %v3560_v28 }
  0x55   :  { %2875 = vmatprep.subr.bf16.mxu1 %v2874_v63  ;;  %v3904_v18 = vrot.slane %v637_v29, %v3265_v3  ;;  %v899_v24 = vrot.slane %v3849_v7, %v3471_v40  ;;  %v3923_v29 = vcombine.high %v3717_v0, %v3786_v42  ;;  %v2886_v42 = vpack.c.bf16 %v1375_v2, %v1374_v57 }
  0x56   :  { %1461 = vmatmul.mubr.f32.gmra.mrb[12].mxu1 %v1208_v6  ;;  %2845 = vmatpush3.bf16.msra.mxu0 %v2844_v10  ;;  %v1355_v6 = vld [vmem:[%s4606_s2 + $0x258] sm:$0xff]  ;;  %v1221_v10 = vmul.f32 %v855_v22, %v3155_v16  ;;  %v2852_v22 = vpack.c.bf16 %v3809_v60, %v3804_v58  ;;  %v1356_v58 = vld [vmem:[%s4606_s2 + $0x260] sm:$0xff]  ;;  %v1357_v60 = vld [vmem:[%s4606_s2 + $0x268] sm:$0xff]  ;;  %v903_v16 = vrot.slane %v3849_v7, %v3417_v8 }
  0x57   :  { %1465 = vmatprep.mubr.f32.mxu1 %v1215_v33  ;;  %2847 = vmatprep.subr.bf16.mxu0 %v2846_v13  ;;  %v3861_v13 = vcombine.high %v3835_v9, %v3838_v14  ;;  %v875_v33 = vrot.slane %v3758_v20, %v3471_v40  ;;  %v2880_v32 = vpack.c.bf16 %v1355_v6, %v1354_v19 }
  0x58   :  { %2877 = vmatpush3.bf16.msra.mxu1 %v2876_v1  ;;  %v3896_v63 = vcombine.low %v3812_v61, %v3855_v27  ;;  %v2882_v19 = vpack.c.bf16 %v1373_v55, %v1372_v43  ;;  %v2884_v6 = vpack.c.bf16 %v1357_v60, %v1356_v58  ;;  %v1232_v43 = vmul.f32 %v899_v24, %v3334_v34 }
  0x59   :  { %v1047_v51 = vrot.slane %v3861_v13, %v3417_v8  ;;  %2879 = vmatprep.subr.bf16.mxu1 %v2878_v4  ;;  %v1358_v4 = vld [vmem:[%s4606_s2 + $0x270] sm:$0xff]  ;;  %v947_v57 = vrot.slane %v3923_v29, %v3471_v40  ;;  %v751_v2 = vrot.slane %v3487_v50, %v3899_v21 }
  0x5a   :  { %1466 = vmatmul.mubr.f32.gmra.mrb[14].mxu1 %v1214_v5  ;;  %2849 = vmatpush3.bf16.msra.mxu0 %v2848_v56  ;;  %v715_v56 = vrot.slane %v3431_v15, %v3852_v26  ;;  %v2856_v5 = vpack.c.bf16 %v1327_v23, %v1326_v39  ;;  %v1359_v39 = vld [vmem:[%s4606_s2 + $0x278] sm:$0xff]  ;;  %v927_v0 = vrot.slane %v3896_v63, %v3417_v8 }
  0x5b   :  { %1470 = vmatprep.mubr.f32.mxu1 %v1221_v10  ;;  %2851 = vmatprep.subr.bf16.mxu0 %v2850_v59  ;;  %v3907_v59 = vrot.slane %v639_v25, %v3265_v3  ;;  %v3910_v1 = vmul.f32 %v1047_v51, %v3320_v30  ;;  %v1226_v10 = vmul.f32 %v875_v33, %v3232_v53 }
  0x5c   :  { %2881 = vmatpush3.bf16.msra.mxu1 %v2880_v32  ;;  %v1233_v53 = vmul.f32 %v903_v16, %v3320_v30  ;;  %v1186_v33 = vmul.f32 %v715_v56, %v3237_v54  ;;  %v1193_v23 = vmul.f32 %v743_v36, %v3160_v17  ;;  %v739_v32 = vrot.slane %v3487_v50, %v3852_v26 }
  0x5d   :  { %v3927_v25 = vcombine.high %v3904_v18, %v3907_v59  ;;  %2883 = vmatprep.subr.bf16.mxu1 %v2882_v19  ;;  %v923_v51 = vrot.slane %v3896_v63, %v3471_v40  ;;  %v1239_v60 = vmul.f32 %v927_v0, %v3320_v30  ;;  %v951_v16 = vrot.slane %v3923_v29, %v3417_v8 }
  0x5e   :  { %1471 = vmatmul.mubr.f32.gmra.mrb[16].mxu1 %v1220_v48  ;;  %2853 = vmatpush3.bf16.msra.mxu0 %v2852_v22  ;;  %v3936_v22 = vsub.s32 4, %v3227_v52  ;;  %v2888_v48 = vpack.c.bf16 %v1359_v39, %v1358_v4  ;;  %v3964_v56 = vcombine.high %v3812_v61, %v3855_v27  ;;  %v1192_v36 = vmul.f32 %v739_v32, %v3237_v54 }
  0x5f   :  { %1475 = vmatprep.mubr.f32.mxu1 %v1227_v49  ;;  %2855 = vmatprep.subr.bf16.mxu0 %v2854_v38  ;;  %v1071_v52 = vrot.slane %v3927_v25, %v3417_v8  ;;  %v767_v38 = vrot.slane %v3521_v12, %v3560_v28  ;;  %v727_v49 = vrot.slane %v3431_v15, %v3899_v21 }
  0x60   :  { %2885 = vmatpush3.bf16.msra.mxu1 %v2884_v6  ;;  %v723_v58 = vrot.slane %v3431_v15, %v3936_v22  ;;  %v747_v24 = vrot.slane %v3487_v50, %v3936_v22  ;;  %v775_v61 = vrot.slane %v3521_v12, %v3899_v21  ;;  %v1238_v27 = vmul.f32 %v923_v51, %v3334_v34 }
  0x61   :  { %v3955_v55 = vmul.f32 %v1071_v52, %v3320_v30  ;;  %2887 = vmatprep.subr.bf16.mxu1 %v2886_v42  ;;  %v1199_v19 = vmul.f32 %v767_v38, %v3160_v17  ;;  %v791_v6 = vrot.slane %v3587_v44, %v3560_v28  ;;  %v975_v4 = vrot.slane %v3964_v56, %v3417_v8 }
  0x62   :  { %1476 = vmatmul.mubr.f32.gmra.mrb[18].mxu1 %v1226_v10  ;;  %2857 = vmatpush3.bf16.msra.mxu0 %v2856_v5  ;;  %v763_v5 = vrot.slane %v3521_v12, %v3852_v26  ;;  %v1245_v10 = vmul.f32 %v951_v16, %v3320_v30  ;;  %v3986_v39 = vcombine.low %v3835_v9, %v3838_v14 }
  0x63   :  { %1480 = vmatprep.mubr.f32.mxu1 %v1233_v53  ;;  %v1244_v53 = vmul.f32 %v947_v57, %v3334_v34  ;;  %v771_v0 = vrot.slane %v3521_v12, %v3936_v22  ;;  %v799_v42 = vrot.slane %v3587_v44, %v3899_v21  ;;  %v795_v32 = vrot.slane %v3587_v44, %v3936_v22 }
  0x64   :  { %2889 = vmatpush3.bf16.msra.mxu1 %v2888_v48  ;;  %v823_v9 = vrot.slane %v3646_v11, %v3899_v21  ;;  %v1205_v14 = vmul.f32 %v791_v6, %v3160_v17  ;;  %v971_v52 = vrot.slane %v3964_v56, %v3471_v40  ;;  %v1251_v38 = vmul.f32 %v975_v4, %v3320_v30 }
  0x65   :  { %1586 = vmatmul.mubr.f32.vlgmr.msra.gmra.mrb[8].mxu0 %v1186_v33  ;;  %v1198_v33 = vmul.f32 %v763_v5, %v3237_v54  ;;  %v999_v48 = vrot.slane %v3986_v39, %v3417_v8  ;;  %v4010_v51 = vcombine.low %v3904_v18, %v3907_v59  ;;  %v819_v16 = vrot.slane %v3646_v11, %v3936_v22 }
  0x66   :  { %1481 = vmatmul.mubr.f32.gmra.mrb[20].mxu1 %v1232_v43  ;;  %1590 = vmatprep.mubr.f32.mxu0 %v1193_v23  ;;  %v787_v23 = vrot.slane %v3587_v44, %v3852_v26  ;;  %v815_v43 = vrot.slane %v3646_v11, %v3560_v28  ;;  %v839_v5 = vrot.slane %v3669_v37, %v3560_v28 }
  0x67   :  { %1485 = vmatprep.mubr.f32.mxu1 %v1239_v60  ;;  %v811_v60 = vrot.slane %v3646_v11, %v3852_v26  ;;  %v871_v18 = vrot.slane %v3711_v62, %v3899_v21  ;;  %v1250_v59 = vmul.f32 %v971_v52, %v3334_v34  ;;  %v995_v6 = vrot.slane %v3986_v39, %v3471_v40  ;;  %v2946_v11 = vld [vmem:[%s4605_s0 + $0x48] sm:$0xff] }
  0x68   :  { %v1204_v57 = vmul.f32 %v787_v23, %v3237_v54  ;;  %v1023_v4 = vrot.slane %v4010_v51, %v3417_v8  ;;  %v895_v52 = vrot.slane %v3758_v20, %v3899_v21  ;;  %v1194_v15 = vmul.f32 %v747_v24, %v3369_v46 }
  0x69   :  { %1591 = vmatmul.mubr.f32.gmra.mrb[10].mxu0 %v1192_v36  ;;  %v847_v36 = vrot.slane %v3669_v37, %v3899_v21  ;;  %v1210_v23 = vmul.f32 %v811_v60, %v3237_v54  ;;  %v863_v60 = vrot.slane %v3711_v62, %v3560_v28  ;;  %v1200_v50 = vmul.f32 %v771_v0, %v3369_v46 }
  0x6a   :  { %1486 = vmatmul.mubr.f32.gmra.mrb[22].mxu1 %v1238_v27  ;;  %1595 = vmatprep.mubr.f32.mxu0 %v1199_v19  ;;  %v843_v27 = vrot.slane %v3669_v37, %v3936_v22  ;;  %v1211_v19 = vmul.f32 %v815_v43, %v3160_v17  ;;  %v891_v43 = vrot.slane %v3758_v20, %v3936_v22 }
  0x6b   :  { %1490 = vmatprep.mubr.f32.mxu1 %v1245_v10  ;;  %v1257_v10 = vmul.f32 %v999_v48, %v3320_v30  ;;  %v1019_v48 = vrot.slane %v4010_v51, %v3471_v40  ;;  %v1206_v12 = vmul.f32 %v795_v32, %v3369_v46  ;;  %v1212_v44 = vmul.f32 %v819_v16, %v3369_v46 }
  0x6d   :  { %1596 = vmatmul.mubr.f32.gmra.mrb[12].mxu0 %v1198_v33  ;;  %v835_v33 = vrot.slane %v3669_v37, %v3852_v26  ;;  %v1262_v8 = vmul.f32 %v1019_v48, %v3334_v34  ;;  %v1035_v48 = vrot.slane %v4010_v51, %v3936_v22  ;;  %v2947_v37 = vld [vmem:[%s4605_s0 + $0x40] sm:$0xff] }
  0x6e   :  { %1491 = vmatmul.mubr.f32.gmra.mrb[24].mxu1 %v1244_v53  ;;  %1600 = vmatprep.mubr.f32.mxu0 %v1205_v14  ;;  %v867_v53 = vrot.slane %v3711_v62, %v3936_v22  ;;  %v1217_v14 = vmul.f32 %v839_v5, %v3160_v17  ;;  %v1263_v17 = vmul.f32 %v1023_v4, %v3320_v30 }
  0x6f   :  { %1495 = vmatprep.mubr.f32.mxu1 %v1251_v38  ;;  %v1256_v38 = vmul.f32 %v995_v6, %v3334_v34  ;;  %v1043_v5 = vrot.slane %v3861_v13, %v3471_v40  ;;  %v943_v6 = vrot.slane %v3896_v63, %v3899_v21 }
  0x71   :  { %1601 = vmatmul.mubr.f32.gmra.mrb[14].mxu0 %v1204_v57  ;;  %v1216_v57 = vmul.f32 %v835_v33, %v3237_v54  ;;  %v1268_v4 = vmul.f32 %v1043_v5, %v3334_v34  ;;  %v907_v5 = vrot.slane %v3849_v7, %v3852_v26 }
  0x72   :  { %1496 = vmatmul.mubr.f32.gmra.mrb[26].mxu1 %v1250_v59  ;;  %1605 = vmatprep.mubr.f32.mxu0 %v1211_v19  ;;  %v859_v59 = vrot.slane %v3711_v62, %v3852_v26  ;;  %v883_v19 = vrot.slane %v3758_v20, %v3852_v26 }
  0x73   :  { %1500 = vmatprep.mubr.f32.mxu1 %v1257_v10  ;;  %v887_v10 = vrot.slane %v3758_v20, %v3560_v28  ;;  %v1243_v20 = vmul.f32 %v943_v6, %v3580_v41  ;;  %v4616_v6 = vrot.slane %v3964_v56, %v3899_v21 }
  0x74   :  { %v1222_v33 = vmul.f32 %v859_v59, %v3237_v54  ;;  %v1083_v59 = vrot.slane %v3927_v25, %v3936_v22 }
  0x75   :  { %1606 = vmatmul.mubr.f32.gmra.mrb[16].mxu0 %v1210_v23  ;;  %v2945_v23 = vld [vmem:[%s4605_s0 + $0x18] sm:$0xff] }
  0x76   :  { %1501 = vmatmul.mubr.f32.gmra.mrb[28].mxu1 %v1256_v38  ;;  %1610 = vmatprep.mubr.f32.mxu0 %v1217_v14  ;;  %v1223_v30 = vmul.f32 %v2945_v23, %v863_v60  ;;  %v1063_v60 = vrot.slane %v3861_v13, %v3899_v21  ;;  %v1229_v14 = vmul.f32 %v2945_v23, %v887_v10 }
  0x77   :  { %1505 = vmatprep.mubr.f32.mxu1 %v1263_v17  ;;  %v1067_v38 = vrot.slane %v3927_v25, %v3471_v40  ;;  %v1228_v17 = vmul.f32 %v883_v19, %v3237_v54  ;;  %v935_v10 = vrot.slane %v3896_v63, %v3560_v28  ;;  %v1234_v54 = vmul.f32 %v907_v5, %v3339_v35 }
  0x78   :  { %v931_v19 = vrot.slane %v3896_v63, %v3852_v26  ;;  %v955_v23 = vrot.slane %v3923_v29, %v3852_v26  ;;  %v1007_v5 = vrot.slane %v3986_v39, %v3560_v28 }
  0x79   :  { %1611 = vmatmul.mubr.f32.gmra.mrb[18].mxu0 %v1216_v57  ;;  %v911_v57 = vrot.slane %v3849_v7, %v3560_v28 }
  0x7a   :  { %1506 = vmatmul.mubr.f32.gmra.mrb[30].mxu1 %v1262_v8  ;;  %1615 = vmatprep.mubr.f32.mxu0 %v1223_v30  ;;  %v1274_v8 = vmul.f32 %v1067_v38, %v3334_v34  ;;  %v1188_v34 = vmul.f32 %v723_v58, %v3369_v46  ;;  %v1246_v38 = vmul.f32 %v955_v23, %v3339_v35 }
  0x7b   :  { %1510 = vmatprep.mubr.f32.mxu1 %v3910_v1  ;;  %v1235_v30 = vmul.f32 %v911_v57, %v3325_v31  ;;  %v1189_v1 = vmul.f32 %v727_v49, %v3364_v45  ;;  %v1195_v49 = vmul.f32 %v751_v2, %v3364_v45  ;;  %v1201_v2 = vmul.f32 %v775_v61, %v3364_v45 }
  0x7c   :  { %v1207_v61 = vmul.f32 %v799_v42, %v3364_v45  ;;  %v1259_v0 = vmul.f32 %v1007_v5, %v3325_v31  ;;  %v1213_v42 = vmul.f32 %v823_v9, %v3364_v45  ;;  %v1219_v9 = vmul.f32 %v847_v36, %v3364_v45 }
  0x7d   :  { %1616 = vmatmul.mubr.f32.gmra.mrb[20].mxu0 %v1222_v33  ;;  %v1240_v33 = vmul.f32 %v931_v19, %v3339_v35  ;;  %v1079_v36 = vrot.slane %v3927_v25, %v3560_v28  ;;  %v4614_v23 = vrot.slane %v3923_v29, %v3899_v21 }
  0x7e   :  { %1511 = vmatmul.mubr.f32.gmra.mrb[32].mxu1 %v1268_v4  ;;  %1620 = vmatprep.mubr.f32.mxu0 %v1229_v14  ;;  %v959_v4 = vrot.slane %v3923_v29, %v3560_v28  ;;  %v983_v14 = vrot.slane %v3964_v56, %v3560_v28 }
  0x7f   :  { %1515 = vmatprep.mubr.f32.mxu1 %v3955_v55  ;;  %v1241_v55 = vmul.f32 %v935_v10, %v3325_v31 }
  0x80   :  { %v1247_v58 = vmul.f32 %v959_v4, %v3325_v31  ;;  %v1253_v24 = vmul.f32 %v983_v14, %v3325_v31  ;;  %v1277_v4 = vmul.f32 %v2946_v11, %v1079_v36  ;;  %v1255_v14 = vmul.f32 %v4616_v6, %v3580_v41 }
  0x81   :  { %1621 = vmatmul.mubr.f32.gmra.mrb[22].mxu0 %v1228_v17  ;;  %v979_v17 = vrot.slane %v3964_v56, %v3852_v26 }
  0x82   :  { %1516 = vmatmul.mubr.f32.gmra.mrb[34].mxu1 %v1274_v8  ;;  %1625 = vmatprep.mubr.f32.mxu0 %v1235_v30  ;;  %v1003_v8 = vrot.slane %v3986_v39, %v3852_v26  ;;  %v1031_v30 = vrot.slane %v4010_v51, %v3560_v28 }
  0x83   :  { %1730 = vmatprep.mubr.f32.mxu1 %v1189_v1  ;;  %v1252_v57 = vmul.f32 %v979_v17, %v3339_v35  ;;  %v1027_v1 = vrot.slane %v4010_v51, %v3852_v26 }
  0x84   :  { %v1258_v10 = vmul.f32 %v1003_v8, %v3339_v35  ;;  %v1265_v32 = vmul.f32 %v1031_v30, %v3325_v31  ;;  %v1218_v31 = vmul.f32 %v843_v27, %v3369_v46  ;;  %v4622_v8 = vrot.slane %v3927_v25, %v3899_v21 }
  0x85   :  { %1626 = vmatmul.mubr.f32.gmra.mrb[24].mxu0 %v1234_v54  ;;  %v1055_v54 = vrot.slane %v3861_v13, %v3560_v28  ;;  %v1264_v19 = vmul.f32 %v1027_v1, %v3339_v35  ;;  %v1225_v35 = vmul.f32 %v871_v18, %v3364_v45  ;;  %v1224_v28 = vmul.f32 %v867_v53, %v3369_v46 }
  0x86   :  { %1731 = vmatmul.mubr.f32.vlgmr.msra.gmra.mrb[36].mxu1 %v1188_v34  ;;  %1630 = vmatprep.mubr.f32.mxu0 %v1241_v55  ;;  %v1051_v34 = vrot.slane %v3861_v13, %v3852_v26  ;;  %v1075_v55 = vrot.slane %v3927_v25, %v3852_v26  ;;  %v1231_v18 = vmul.f32 %v895_v52, %v3364_v45  ;;  %v2948_v26 = vld [vmem:[%s4605_s0 + $0x20] sm:$0xff] }
  0x87   :  { %1735 = vmatprep.mubr.f32.mxu1 %v1195_v49  ;;  %v1271_v16 = vmul.f32 %v2946_v11, %v1055_v54  ;;  %v1230_v62 = vmul.f32 %v2948_v26, %v891_v43  ;;  %v4611_v46 = vrot.slane %v3849_v7, %v3899_v21  ;;  %v4612_v45 = vrot.slane %v3849_v7, %v3936_v22  ;;  %v1970_v54 = vld [vmem:[%s4607_s4 + $0x10] sm:$0xff] }
  0x88   :  { %v1270_v27 = vmul.f32 %v2947_v37, %v1051_v34  ;;  %v1276_v49 = vmul.f32 %v2947_v37, %v1075_v55  ;;  %v4613_v43 = vrot.slane %v3896_v63, %v3936_v22  ;;  %v4615_v7 = vrot.slane %v3923_v29, %v3936_v22 }
  0x89   :  { %1631 = vmatmul.mubr.f32.gmra.mrb[26].mxu0 %v1240_v33  ;;  %v1237_v53 = vmul.f32 %v4611_v46, %v3580_v41  ;;  %v1236_v52 = vmul.f32 %v4612_v45, %v3592_v47  ;;  %v4617_v63 = vrot.slane %v3964_v56, %v3936_v22  ;;  %v4619_v29 = vrot.slane %v3986_v39, %v3936_v22 }
  0x8a   :  { %1736 = vmatmul.mubr.f32.gmra.mrb[38].mxu1 %v1194_v15  ;;  %1635 = vmatprep.mubr.f32.mxu0 %v1247_v58  ;;  %v1242_v33 = vmul.f32 %v4613_v43, %v3592_v47  ;;  %v1249_v15 = vmul.f32 %v4614_v23, %v3580_v41  ;;  %v1248_v58 = vmul.f32 %v4615_v7, %v3592_v47 }
  0x8b   :  { %1740 = vmatprep.mubr.f32.mxu1 %v1201_v2  ;;  %v1254_v2 = vmul.f32 %v4617_v63, %v3592_v47  ;;  %v1266_v56 = vmul.f32 %v1035_v48, %v3592_v47  ;;  %v1968_v48 = vld [vmem:[%s4607_s4] sm:$0xff] }
  0x8d   :  { %1636 = vmatmul.mubr.f32.gmra.mrb[28].mxu0 %v1246_v38  ;;  %v4618_v38 = vrot.slane %v3986_v39, %v3899_v21  ;;  %v4621_v39 = vrot.slane %v3861_v13, %v3936_v22  ;;  %v1969_v13 = vld [vmem:[%s4607_s4 + $0x8] sm:$0xff] }
  0x8e   :  { %1741 = vmatmul.mubr.f32.gmra.mrb[40].mxu1 %v1200_v50  ;;  %1640 = vmatprep.mubr.f32.mxu0 %v1253_v24  ;;  %v1260_v50 = vmul.f32 %v4619_v29, %v3592_v47  ;;  %v4620_v24 = vrot.slane %v4010_v51, %v3899_v21  ;;  %v1278_v51 = vmul.f32 %v1083_v59, %v3592_v47 }
  0x8f   :  { %1745 = vmatprep.mubr.f32.mxu1 %v1207_v61  ;;  %v1261_v17 = vmul.f32 %v4618_v38, %v3580_v41  ;;  %v1273_v61 = vmul.f32 %v1063_v60, %v3580_v41  ;;  %v2890_v60 = vpack.c.bf16 %v1969_v13, %v1968_v48 }
  0x90   :  { %v1267_v5 = vmul.f32 %v4620_v24, %v3580_v41 }
  0x91   :  { %1641 = vmatmul.mubr.f32.gmra.mrb[30].mxu0 %v1252_v57  ;;  %v1272_v57 = vmul.f32 %v4621_v39, %v3592_v47  ;;  %2891 = vmatprep.subr.bf16.mxu0 %v2890_v60 }
  0x92   :  { %1746 = vmatmul.mubr.f32.gmra.mrb[42].mxu1 %v1206_v12  ;;  %1645 = vmatprep.mubr.f32.mxu0 %v1259_v0  ;;  %v1279_v12 = vmul.f32 %v4622_v8, %v3580_v41 }
  0x93   :  { %1750 = vmatprep.mubr.f32.mxu1 %v1213_v42  ;;  %2893 = vmatpush3.bf16.msra.mxu0 %v2890_v60 }
  0x95   :  { %1646 = vmatmul.mubr.f32.gmra.mrb[32].mxu0 %v1258_v10 }
  0x96   :  { %1751 = vmatmul.mubr.f32.gmra.mrb[44].mxu1 %v1212_v44  ;;  %1650 = vmatprep.mubr.f32.mxu0 %v1265_v32 }
  0x97   :  { %1755 = vmatprep.mubr.f32.mxu1 %v1219_v9  ;;  %v1971_v9 = vld [vmem:[%s4607_s4 + $0x18] sm:$0xff] }
  0x99   :  { %1651 = vmatmul.mubr.f32.gmra.mrb[34].mxu0 %v1264_v19  ;;  %v2894_v19 = vpack.c.bf16 %v1971_v9, %v1970_v54 }
  0x9a   :  { %1756 = vmatmul.mubr.f32.gmra.mrb[46].mxu1 %v1218_v31  ;;  %1655 = vmatprep.mubr.f32.mxu0 %v1271_v16 }
  0x9b   :  { %1760 = vmatprep.mubr.f32.mxu1 %v1225_v35  ;;  %2895 = vmatprep.subr.bf16.mxu0 %v2894_v19 }
  0x9c   :  { %2897 = vmatpush3.bf16.msra.mxu0 %v2894_v19 }
  0x9d   :  { %1656 = vmatmul.mubr.f32.gmra.mrb[36].mxu0 %v1270_v27 }
  0x9e   :  { %1761 = vmatmul.mubr.f32.gmra.mrb[48].mxu1 %v1224_v28  ;;  %1660 = vmatprep.mubr.f32.mxu0 %v1277_v4 }
  0x9f   :  { %1765 = vmatprep.mubr.f32.mxu1 %v1231_v18 }
  0xa1   :  { %1661 = vmatmul.mubr.f32.gmra.mrb[38].mxu0 %v1276_v49 }
  0xa2   :  { %1766 = vmatmul.mubr.f32.gmra.mrb[50].mxu1 %v1230_v62 }
  0xa3   :  { %1770 = vmatprep.mubr.f32.mxu1 %v1237_v53 }
  0xa6   :  { %1771 = vmatmul.mubr.f32.gmra.mrb[52].mxu1 %v1236_v52 }
  0xa7   :  { %1775 = vmatprep.mubr.f32.mxu1 %v1243_v20 }
  0xaa   :  { %1776 = vmatmul.mubr.f32.gmra.mrb[54].mxu1 %v1242_v33 }
  0xab   :  { %1780 = vmatprep.mubr.f32.mxu1 %v1249_v15 }
  0xae   :  { %1781 = vmatmul.mubr.f32.gmra.mrb[56].mxu1 %v1248_v58 }
  0xaf   :  { %1785 = vmatprep.mubr.f32.mxu1 %v1255_v14 }
  0xb2   :  { %1786 = vmatmul.mubr.f32.gmra.mrb[58].mxu1 %v1254_v2 }
  0xb3   :  { %1790 = vmatprep.mubr.f32.mxu1 %v1261_v17 }
  0xb6   :  { %1791 = vmatmul.mubr.f32.gmra.mrb[60].mxu1 %v1260_v50 }
  0xb7   :  { %1795 = vmatprep.mubr.f32.mxu1 %v1267_v5 }
  0xba   :  { %1796 = vmatmul.mubr.f32.gmra.mrb[62].mxu1 %v1266_v56 }
  0xbb   :  { %1800 = vmatprep.mubr.f32.mxu1 %v1273_v61 }
  0xbe   :  { %1801 = vmatmul.mubr.f32.gmra.mrb[64].mxu1 %v1272_v57 }
  0xbf   :  { %1805 = vmatprep.mubr.f32.mxu1 %v1279_v12 }
  0xc2   :  { %1806 = vmatmul.mubr.f32.gmra.mrb[66].mxu1 %v1278_v51 }
  0xf8   :  { %v2324_v41 = vpop.f32.mrb[0].mxu0 }
  0xf9   :  { %v2362_v21 = vpop.f32.mrb[0].mxu1  ;;  %v2325_v0 = vpop.f32.mrb[1].mxu0 }
  0xfa   :  { %v2326_v30 = vadd.f32 %v2325_v0, %v2324_v41  ;;  %v2363_v42 = vpop.f32.mrb[1].mxu1 }
  0xfb   :  { %v2364_v25 = vadd.f32 %v2363_v42, %v2362_v21 }
  0xfc   :  { %v2327_v22 = vpop.f32.mrb[2].mxu0 }
  0xfd   :  { %v273_v47 = vadd.f32 %v2364_v25, %v2326_v30  ;;  %v2365_v59 = vpop.f32.mrb[2].mxu1  ;;  %v2328_v10 = vpop.f32.mrb[3].mxu0 }
  0xfe   :  { %v2329_v1 = vadd.f32 %v2328_v10, %v2327_v22  ;;  %v2366_v44 = vpop.f32.mrb[3].mxu1 }
  0xff   :  { %v2367_v32 = vadd.f32 %v2366_v44, %v2365_v59 }
 0x101   :  { %v278_v34 = vadd.f32 %v2367_v32, %v2329_v1 }
 0x118   :  { %v2400_v31 = vpop.f32.mrb[4].mxu0 }
 0x119   :  { %v2401_v11 = vpop.f32.mrb[5].mxu0  ;;  %v2438_v16 = vpop.f32.mrb[4].mxu1 }
 0x11a   :  { %v2402_v36 = vadd.f32 %v2401_v11, %v2400_v31  ;;  %v2439_v35 = vpop.f32.mrb[5].mxu1 }
 0x11b   :  { %v2440_v37 = vadd.f32 %v2439_v35, %v2438_v16 }
 0x11c   :  { %v4293_v27 = vadd.f32 %v2402_v36, %v273_v47  ;;  %v2403_v55 = vpop.f32.mrb[6].mxu0 }
 0x11d   :  { %v2404_v28 = vpop.f32.mrb[7].mxu0  ;;  %v2441_v4 = vpop.f32.mrb[6].mxu1 }
 0x11e   :  { %v2405_v18 = vadd.f32 %v2404_v28, %v2403_v55  ;;  %1907 = vrot.lane.b32.xlu0 %v4293_v27, %s2950_s29  ;;  %v2442_v49 = vpop.f32.mrb[7].mxu1 }
 0x11f   :  { %v2443_v26 = vadd.f32 %v2442_v49, %v2441_v4 }
 0x120   :  { %v4296_v62 = vadd.f32 %v2405_v18, %v278_v34 }
 0x121   :  { %v2444_v46 = vpop.f32.mrb[8].mxu1 }
 0x122   :  { %1909 = vrot.lane.b32.xlu0 %v4296_v62, %s2950_s29  ;;  %v2445_v53 = vpop.f32.mrb[9].mxu1 }
 0x123   :  { %v2446_v45 = vadd.f32 %v2445_v53, %v2444_v46 }
 0x125   :  { %v2447_v52 = vpop.f32.mrb[10].mxu1 }
 0x126   :  { %v2448_v20 = vpop.f32.mrb[11].mxu1 }
 0x127   :  { %v2449_v43 = vadd.f32 %v2448_v20, %v2447_v52 }
 0x129   :  { %v2450_v33 = vpop.f32.mrb[12].mxu1 }
 0x12a   :  { %v2451_v23 = vpop.f32.mrb[13].mxu1 }
 0x12b   :  { %v2452_v15 = vadd.f32 %v2451_v23, %v2450_v33 }
 0x12d   :  { %v2453_v7 = vpop.f32.mrb[14].mxu1 }
 0x12e   :  { %v2454_v58 = vpop.f32.mrb[15].mxu1 }
 0x12f   :  { %v2455_v6 = vadd.f32 %v2454_v58, %v2453_v7 }
 0x131   :  { %v2456_v14 = vpop.f32.mrb[16].mxu1 }
 0x132   :  { %v2457_v63 = vpop.f32.mrb[17].mxu1 }
 0x133   :  { %v2458_v2 = vadd.f32 %v2457_v63, %v2456_v14 }
 0x135   :  { %v2459_v38 = vpop.f32.mrb[18].mxu1 }
 0x136   :  { %v2460_v17 = vpop.f32.mrb[19].mxu1 }
 0x137   :  { %v2461_v29 = vadd.f32 %v2460_v17, %v2459_v38 }
 0x138   :  { %v2518_v50 = vpop.f32.mrb[8].mxu0 }
 0x139   :  { %v2519_v24 = vpop.f32.mrb[9].mxu0  ;;  %v2462_v5 = vpop.f32.mrb[20].mxu1 }
 0x13a   :  { %v2520_v56 = vadd.f32 %v2519_v24, %v2518_v50  ;;  %v2463_v61 = vpop.f32.mrb[21].mxu1 }
 0x13b   :  { %v2464_v39 = vadd.f32 %v2463_v61, %v2462_v5 }
 0x13c   :  { %v1588_v57 = vadd.f32 %v2520_v56, %v2440_v37  ;;  %v2521_v8 = vpop.f32.mrb[10].mxu0 }
 0x13d   :  { %v2522_v12 = vpop.f32.mrb[11].mxu0  ;;  %v2465_v51 = vpop.f32.mrb[22].mxu1 }
 0x13e   :  { %v2523_v48 = vadd.f32 %v2522_v12, %v2521_v8  ;;  %v2466_v13 = vpop.f32.mrb[23].mxu1 }
 0x13f   :  { %v4299_v60 = vadd.f32 %v2466_v13, %v2465_v51 }
 0x140   :  { %v4301_v41 = vadd.f32 %v2523_v48, %v2443_v26  ;;  %v2524_v21 = vpop.f32.mrb[12].mxu0 }
 0x141   :  { %v2525_v0 = vpop.f32.mrb[13].mxu0  ;;  %v2468_v30 = vpop.f32.mrb[24].mxu1 }
 0x142   :  { %v2526_v42 = vadd.f32 %v2525_v0, %v2524_v21  ;;  %v2469_v25 = vpop.f32.mrb[25].mxu1 }
 0x143   :  { %v4303_v47 = vadd.f32 %v2469_v25, %v2468_v30 }
 0x144   :  { %v4305_v22 = vadd.f32 %v2526_v42, %v2446_v45  ;;  %v2527_v59 = vpop.f32.mrb[14].mxu0 }
 0x145   :  { %v2528_v10 = vpop.f32.mrb[15].mxu0  ;;  %v2471_v1 = vpop.f32.mrb[26].mxu1 }
 0x146   :  { %v2529_v44 = vadd.f32 %v2528_v10, %v2527_v59  ;;  %v2472_v32 = vpop.f32.mrb[27].mxu1 }
 0x147   :  { %v4307_v54 = vadd.f32 %v2472_v32, %v2471_v1 }
 0x148   :  { %v4309_v9 = vadd.f32 %v2529_v44, %v2449_v43  ;;  %v2530_v19 = vpop.f32.mrb[16].mxu0 }
 0x149   :  { %v2531_v34 = vpop.f32.mrb[17].mxu0  ;;  %v2474_v31 = vpop.f32.mrb[28].mxu1 }
 0x14a   :  { %v2532_v11 = vadd.f32 %v2531_v34, %v2530_v19  ;;  %v2475_v16 = vpop.f32.mrb[29].mxu1 }
 0x14b   :  { %v4311_v36 = vadd.f32 %v2475_v16, %v2474_v31 }
 0x14c   :  { %v4313_v35 = vadd.f32 %v2532_v11, %v2452_v15  ;;  %v2533_v37 = vpop.f32.mrb[18].mxu0  ;;  %v365_v15 = vrot.slane %v4293_v27, %v3265_v3 }
 0x14d   :  { %v2534_v55 = vpop.f32.mrb[19].mxu0  ;;  %v2477_v28 = vpop.f32.mrb[30].mxu1 }
 0x14e   :  { %v2535_v4 = vadd.f32 %v2534_v55, %v2533_v37  ;;  %v2478_v18 = vpop.f32.mrb[31].mxu1  ;;  %v373_v50 = vcombine.high %v365_v15, %v365_v15  ;;  %v381_v56 = vrot.slane %v365_v15, %v3265_v3 }
 0x14f   :  { %v4315_v49 = vadd.f32 %v2478_v18, %v2477_v28 }
 0x150   :  { %v4317_v26 = vadd.f32 %v2535_v4, %v2455_v6  ;;  %v2536_v46 = vpop.f32.mrb[20].mxu0  ;;  %v1814_v13 = vrot.slane %v381_v56, %v3471_v40  ;;  %v403_v34 = vcombine.high %v381_v56, %v381_v56 }
 0x151   :  { %v2537_v53 = vpop.f32.mrb[21].mxu0  ;;  %v2480_v45 = vpop.f32.mrb[32].mxu1 }
 0x152   :  { %v2538_v52 = vadd.f32 %v2537_v53, %v2536_v46  ;;  %v2481_v20 = vpop.f32.mrb[33].mxu1 }
 0x153   :  { %v4319_v43 = vadd.f32 %v2481_v20, %v2480_v45 }
 0x154   :  { %v4321_v33 = vadd.f32 %v2538_v52, %v2458_v2  ;;  %v2539_v23 = vpop.f32.mrb[22].mxu0 }
 0x155   :  { %v2540_v7 = vpop.f32.mrb[23].mxu0  ;;  %v2483_v58 = vpop.f32.mrb[34].mxu1 }
 0x156   :  { %v2541_v14 = vadd.f32 %v2540_v7, %v2539_v23  ;;  %v2484_v63 = vpop.f32.mrb[35].mxu1 }
 0x157   :  { %v4325_v38 = vadd.f32 %v2484_v63, %v2483_v58 }
 0x158   :  { %v4327_v6 = vadd.f32 %v2541_v14, %v2461_v29  ;;  %v2542_v17 = vpop.f32.mrb[24].mxu0  ;;  %v395_v29 = vrot.slane %v373_v50, %v3265_v3 }
 0x159   :  { %v2598_v24 = vpop.f32.mrb[36].mxu1  ;;  %v2543_v5 = vpop.f32.mrb[25].mxu0 }
 0x15a   :  { %v2544_v2 = vadd.f32 %v2543_v5, %v2542_v17  ;;  %v2599_v61 = vpop.f32.mrb[37].mxu1  ;;  %v1818_v44 = vrot.slane %v395_v29, %v3471_v40  ;;  %v405_v46 = vcombine.high %v395_v29, %v395_v29 }
 0x15b   :  { %v2600_v8 = vadd.f32 %v2599_v61, %v2598_v24 }
 0x15c   :  { %v4330_v12 = vadd.f32 %v2544_v2, %v2464_v39  ;;  %v2545_v51 = vpop.f32.mrb[26].mxu0  ;;  %v358_v39 = vcombine.high %v4293_v27, %v4293_v27  ;;  %v1826_v7 = vrot.slane %v405_v46, %v3471_v40 }
 0x15d   :  { %v1733_v48 = vadd.f32 %v2600_v8, %v1588_v57  ;;  %v2601_v21 = vpop.f32.mrb[38].mxu1  ;;  %v2546_v0 = vpop.f32.mrb[27].mxu0 }
 0x15e   :  { %v2547_v30 = vadd.f32 %v2546_v0, %v2545_v51  ;;  %v2602_v42 = vpop.f32.mrb[39].mxu1  ;;  %v372_v28 = vrot.slane %v358_v39, %v3265_v3 }
 0x15f   :  { %v4334_v25 = vadd.f32 %v1814_v13, %v1733_v48  ;;  %v2603_v59 = vadd.f32 %v2602_v42, %v2601_v21 }
 0x160   :  { %v4337_v10 = vadd.f32 %v2547_v30, %v4299_v60  ;;  %v2548_v1 = vpop.f32.mrb[28].mxu0  ;;  %v388_v14 = vrot.slane %v372_v28, %v3265_v3  ;;  %v374_v63 = vcombine.high %v372_v28, %v372_v28 }
 0x161   :  { %v1738_v57 = vadd.f32 %v2603_v59, %v4301_v41  ;;  %v2604_v32 = vpop.f32.mrb[40].mxu1  ;;  %v2549_v19 = vpop.f32.mrb[29].mxu0  ;;  %v1822_v41 = vrot.slane %v403_v34, %v3471_v40 }
 0x162   :  { %v2550_v31 = vadd.f32 %v2549_v19, %v2548_v1  ;;  %v2605_v11 = vpop.f32.mrb[41].mxu1  ;;  %v402_v51 = vrot.slane %v374_v63, %v3265_v3  ;;  %v404_v1 = vcombine.high %v388_v14, %v388_v14 }
 0x163   :  { %v4343_v16 = vadd.f32 %v1818_v44, %v1738_v57  ;;  %v2606_v37 = vadd.f32 %v2605_v11, %v2604_v32 }
 0x164   :  { %v4346_v55 = vadd.f32 %v2550_v31, %v4303_v47  ;;  %v2551_v60 = vpop.f32.mrb[30].mxu0  ;;  %v1834_v42 = vrot.slane %v402_v51, %v3471_v40 }
 0x165   :  { %v1743_v27 = vadd.f32 %v2606_v37, %v4305_v22  ;;  %v2607_v4 = vpop.f32.mrb[42].mxu1  ;;  %v2552_v18 = vpop.f32.mrb[31].mxu0 }
 0x166   :  { %v2553_v53 = vadd.f32 %v2552_v18, %v2551_v60  ;;  %v2608_v45 = vpop.f32.mrb[43].mxu1  ;;  %v406_v60 = vcombine.high %v402_v51, %v402_v51 }
 0x167   :  { %v4351_v52 = vadd.f32 %v1822_v41, %v1743_v27  ;;  %v2609_v20 = vadd.f32 %v2608_v45, %v2607_v4 }
 0x168   :  { %v4354_v23 = vadd.f32 %v2553_v53, %v4307_v54  ;;  %v2554_v47 = vpop.f32.mrb[32].mxu0  ;;  %v1842_v53 = vrot.slane %v406_v60, %v3471_v40  ;;  %v4411_v60 = vld [vmem:[%s4608_s3] ss:$0 sm:$0xff] }
 0x169   :  { %v1748_v15 = vadd.f32 %v2609_v20, %v4309_v9  ;;  %v2610_v58 = vpop.f32.mrb[44].mxu1  ;;  %v2555_v22 = vpop.f32.mrb[33].mxu0  ;;  %v1830_v9 = vrot.slane %v388_v14, %v3471_v40 }
 0x16a   :  { %v2556_v17 = vadd.f32 %v2555_v22, %v2554_v47  ;;  %v2611_v50 = vpop.f32.mrb[45].mxu1 }
 0x16b   :  { %v4359_v24 = vadd.f32 %v1826_v7, %v1748_v15  ;;  %v2612_v5 = vadd.f32 %v2611_v50, %v2610_v58 }
 0x16c   :  { %v4362_v56 = vadd.f32 %v2556_v17, %v4311_v36  ;;  %v2557_v54 = vpop.f32.mrb[34].mxu0 }
 0x16d   :  { %v1753_v2 = vadd.f32 %v2612_v5, %v4313_v35  ;;  %v2613_v61 = vpop.f32.mrb[46].mxu1  ;;  %v2558_v8 = vpop.f32.mrb[35].mxu0 }
 0x16e   :  { %v2559_v48 = vadd.f32 %v2558_v8, %v2557_v54  ;;  %v2614_v13 = vpop.f32.mrb[47].mxu1 }
 0x16f   :  { %v4367_v21 = vadd.f32 %v1830_v9, %v1753_v2  ;;  %v2615_v0 = vadd.f32 %v2614_v13, %v2613_v61 }
 0x170   :  { %v4370_v29 = vadd.f32 %v2559_v48, %v4315_v49  ;;  %v2560_v30 = vpop.f32.mrb[36].mxu0  ;;  %v414_v49 = vrot.slane %v4296_v62, %v3265_v3 }
 0x171   :  { %v1758_v36 = vadd.f32 %v2615_v0, %v4317_v26  ;;  %v2616_v35 = vpop.f32.mrb[48].mxu1  ;;  %v2561_v59 = vpop.f32.mrb[37].mxu0  ;;  %v1838_v26 = vrot.slane %v404_v1, %v3471_v40 }
 0x172   :  { %v2562_v39 = vadd.f32 %v2561_v59, %v2560_v30  ;;  %v2617_v57 = vpop.f32.mrb[49].mxu1 }
 0x173   :  { %v4374_v44 = vadd.f32 %v1834_v42, %v1758_v36  ;;  %v2618_v32 = vadd.f32 %v2617_v57, %v2616_v35 }
 0x174   :  { %v4377_v19 = vadd.f32 %v2562_v39, %v4319_v43  ;;  %v2563_v34 = vpop.f32.mrb[38].mxu0  ;;  %v422_v43 = vcombine.high %v414_v49, %v414_v49 }
 0x175   :  { %v1763_v31 = vadd.f32 %v2618_v32, %v4321_v33  ;;  %v2619_v11 = vpop.f32.mrb[50].mxu1  ;;  %v2564_v37 = vpop.f32.mrb[39].mxu0  ;;  %v430_v33 = vrot.slane %v414_v49, %v3265_v3 }
 0x176   :  { %v2565_v28 = vadd.f32 %v2564_v37, %v2563_v34  ;;  %v2620_v27 = vpop.f32.mrb[51].mxu1  ;;  %v444_v14 = vrot.slane %v422_v43, %v3265_v3 }
 0x177   :  { %v4383_v41 = vadd.f32 %v1838_v26, %v1763_v31  ;;  %v2621_v4 = vadd.f32 %v2620_v27, %v2619_v11  ;;  %v1846_v58 = vrot.slane %v430_v33, %v3471_v40  ;;  %v452_v2 = vcombine.high %v430_v33, %v430_v33 }
 0x178   :  { %v4386_v18 = vadd.f32 %v2565_v28, %v4325_v38  ;;  %v1850_v5 = vrot.slane %v444_v14, %v3471_v40  ;;  %v454_v0 = vcombine.high %v444_v14, %v444_v14 }
 0x179   :  { %v1768_v46 = vadd.f32 %v2621_v4, %v4327_v6  ;;  %v2622_v45 = vpop.f32.mrb[52].mxu1  ;;  %v407_v6 = vcombine.high %v4296_v62, %v4296_v62  ;;  %v1854_v48 = vrot.slane %v452_v2, %v3471_v40 }
 0x17a   :  { %v2623_v20 = vpop.f32.mrb[53].mxu1  ;;  %v1858_v35 = vrot.slane %v454_v0, %v3471_v40 }
 0x17b   :  { %v1898_v47 = vadd.f32 %v1842_v53, %v1768_v46  ;;  %v2624_v15 = vadd.f32 %v2623_v20, %v2622_v45  ;;  %v421_v8 = vrot.slane %v407_v6, %v3265_v3 }
 0x17d   :  { %v1773_v7 = vadd.f32 %v2624_v15, %v4330_v12  ;;  %v2625_v22 = vpop.f32.mrb[54].mxu1  ;;  %v423_v42 = vcombine.high %v421_v8, %v421_v8  ;;  %v437_v1 = vrot.slane %v421_v8, %v3265_v3 }
 0x17e   :  { %v2626_v38 = vpop.f32.mrb[55].mxu1 }
 0x17f   :  { %v1899_v63 = vadd.f32 %v1846_v58, %v1773_v7  ;;  %v2627_v17 = vadd.f32 %v2626_v38, %v2625_v22  ;;  %v1862_v49 = vrot.slane %v437_v1, %v3471_v40  ;;  %v453_v27 = vcombine.high %v437_v1, %v437_v1 }
 0x181   :  { %v1778_v50 = vadd.f32 %v2627_v17, %v4337_v10  ;;  %v2628_v54 = vpop.f32.mrb[56].mxu1 }
 0x182   :  { %v2629_v9 = vpop.f32.mrb[57].mxu1 }
 0x183   :  { %v1900_v61 = vadd.f32 %v1850_v5, %v1778_v50  ;;  %v2630_v12 = vadd.f32 %v2629_v9, %v2628_v54 }
 0x185   :  { %v1783_v51 = vadd.f32 %v2630_v12, %v4346_v55  ;;  %v2631_v13 = vpop.f32.mrb[58].mxu1  ;;  %v451_v55 = vrot.slane %v423_v42, %v3265_v3 }
 0x186   :  { %v2632_v30 = vpop.f32.mrb[59].mxu1 }
 0x187   :  { %v1901_v36 = vadd.f32 %v1854_v48, %v1783_v51  ;;  %v2633_v62 = vadd.f32 %v2632_v30, %v2631_v13  ;;  %v455_v9 = vcombine.high %v451_v55, %v451_v55 }
 0x189   :  { %v1788_v10 = vadd.f32 %v2633_v62, %v4354_v23  ;;  %v2634_v59 = vpop.f32.mrb[60].mxu1  ;;  %v1866_v23 = vrot.slane %v451_v55, %v3471_v40 }
 0x18a   :  { %v2635_v39 = vpop.f32.mrb[61].mxu1 }
 0x18b   :  { %v1902_v57 = vadd.f32 %v1858_v35, %v1788_v10  ;;  %v2636_v32 = vadd.f32 %v2635_v39, %v2634_v59 }
 0x18d   :  { %v1793_v34 = vadd.f32 %v2636_v32, %v4362_v56  ;;  %v2637_v31 = vpop.f32.mrb[62].mxu1 }
 0x18e   :  { %v2638_v26 = vpop.f32.mrb[63].mxu1 }
 0x18f   :  { %v1903_v11 = vadd.f32 %v1862_v49, %v1793_v34  ;;  %v2639_v37 = vadd.f32 %v2638_v26, %v2637_v31 }
 0x190   :  { %v1908_v28 = vpop.permute.xlu0 %1907 }
 0x191   :  { %v1798_v4 = vadd.f32 %v2639_v37, %v4370_v29  ;;  %v2640_v3 = vpop.f32.mrb[64].mxu1  ;;  %v1913_v56 = vadd.f32 %v1908_v28, %v4334_v25  ;;  %v1914_v43 = vadd.f32 %v1908_v28, %v4343_v16  ;;  %v1915_v46 = vadd.f32 %v1908_v28, %v4351_v52 }
 0x192   :  { %v1916_v53 = vadd.f32 %v1908_v28, %v4359_v24  ;;  %v1917_v45 = vadd.f32 %v1908_v28, %v4367_v21  ;;  %v1918_v33 = vadd.f32 %v1908_v28, %v4374_v44  ;;  %v2641_v20 = vpop.f32.mrb[65].mxu1  ;;  %v1919_v7 = vadd.f32 %v1908_v28, %v4383_v41 }
 0x193   :  { %v1904_v15 = vadd.f32 %v1866_v23, %v1798_v4  ;;  %v1936_v58 = vadd.f32 %v4411_v60, %v1913_v56  ;;  %v1937_v29 = vadd.f32 %v4411_v60, %v1914_v43  ;;  %v1920_v22 = vadd.f32 %v1908_v28, %v1898_v47  ;;  %v2275_v4 = vld [vmem:[%s4610_s5] ss:$0 sm:$0xff] }
 0x194   :  { %v1938_v25 = vadd.f32 %v4411_v60, %v1915_v46  ;;  %v1939_v16 = vadd.f32 %v4411_v60, %v1916_v53  ;;  %v1910_v52 = vpop.permute.xlu0 %1909  ;;  %v1940_v24 = vadd.f32 %v4411_v60, %v1917_v45  ;;  %v2642_v21 = vadd.f32 %v2641_v20, %v2640_v3 }
 0x195   :  { %2913 = vtanh.f32 %v1936_v58  ;;  %v1870_v44 = vrot.slane %v453_v27, %v3471_v40  ;;  %v2643_v14 = vpop.f32.mrb[66].mxu1  ;;  %v1941_v38 = vadd.f32 %v4411_v60, %v1918_v33  ;;  %v1921_v41 = vadd.f32 %v1910_v52, %v1899_v63 }
 0x196   :  { %2915 = vtanh.f32 %v1937_v29  ;;  %v1922_v17 = vadd.f32 %v1910_v52, %v1900_v61  ;;  %v2644_v6 = vpop.f32.mrb[67].mxu1  ;;  %v1942_v47 = vadd.f32 %v4411_v60, %v1919_v7  ;;  %v1803_v50 = vadd.f32 %v2642_v21, %v4377_v19 }
 0x197   :  { %2917 = vtanh.f32 %v1938_v25  ;;  %v1923_v5 = vadd.f32 %v1910_v52, %v1901_v36  ;;  %v1943_v54 = vadd.f32 %v4411_v60, %v1920_v22  ;;  %v1924_v2 = vadd.f32 %v1910_v52, %v1902_v57 }
 0x198   :  { %2919 = vtanh.f32 %v1939_v16  ;;  %v1905_v12 = vadd.f32 %v1870_v44, %v1803_v50  ;;  %v1925_v8 = vadd.f32 %v1910_v52, %v1903_v11  ;;  %v1944_v51 = vadd.f32 %v4411_v60, %v1921_v41 }
 0x199   :  { %2921 = vtanh.f32 %v1940_v24  ;;  %v1926_v63 = vadd.f32 %v1910_v52, %v1904_v15  ;;  %v1945_v61 = vadd.f32 %v4411_v60, %v1922_v17  ;;  %v2645_v48 = vadd.f32 %v2644_v6, %v2643_v14 }
 0x19a   :  { %2923 = vtanh.f32 %v1941_v38  ;;  %v1927_v13 = vadd.f32 %v1910_v52, %v1905_v12  ;;  %v1946_v19 = vadd.f32 %v4411_v60, %v1923_v5  ;;  %v1947_v0 = vadd.f32 %v4411_v60, %v1924_v2 }
 0x19b   :  { %2925 = vtanh.f32 %v1942_v47  ;;  %v1808_v30 = vadd.f32 %v2645_v48, %v4386_v18  ;;  %v1874_v36 = vrot.slane %v455_v9, %v3471_v40  ;;  %v1948_v62 = vadd.f32 %v4411_v60, %v1925_v8 }
 0x19c   :  { %2927 = vtanh.f32 %v1943_v54  ;;  %v1949_v42 = vadd.f32 %v4411_v60, %v1926_v63  ;;  %v1950_v59 = vadd.f32 %v4411_v60, %v1927_v13 }
 0x19d   :  { %2929 = vtanh.f32 %v1944_v51  ;;  %v1906_v10 = vadd.f32 %v1874_v36, %v1808_v30 }
 0x19e   :  { %2931 = vtanh.f32 %v1945_v61 }
 0x19f   :  { %v2914_v35 = vpop.eup %2913  ;;  %2933 = vtanh.f32 %v1946_v19  ;;  %v1928_v39 = vadd.f32 %v1910_v52, %v1906_v10 }
 0x1a0   :  { %v2916_v1 = vpop.eup %2915  ;;  %2935 = vtanh.f32 %v1947_v0  ;;  %2674 = vmatprep.mubr.msk.f32.mxu0 %vm1979_vm0, %v2914_v35  ;;  %2173 = vst.msk [vmem:[%s4609_s6] sm:$0xff] %vm1979_vm0, %v2914_v35 }
 0x1a1   :  { %v2918_v40 = vpop.eup %2917  ;;  %2937 = vtanh.f32 %v1948_v62  ;;  %2675 = vmatmul.mubr.msk.f32.vlgmr.msra.gmra.mrb[40].mxu0 %vm1979_vm0, %v2916_v1  ;;  %2174 = vst.msk [vmem:[%s4609_s6 + $0x8] sm:$0xff] %vm1979_vm0, %v2916_v1  ;;  %v1951_v57 = vadd.f32 %v4411_v60, %v1928_v39 }
 0x1a2   :  { %v2920_v18 = vpop.eup %2919  ;;  %2939 = vtanh.f32 %v1949_v42  ;;  %2677 = vmatprep.mubr.msk.f32.mxu0 %vm1979_vm0, %v2918_v40  ;;  %2175 = vst.msk [vmem:[%s4609_s6 + $0x10] sm:$0xff] %vm1979_vm0, %v2918_v40 }
 0x1a3   :  { %v2922_v32 = vpop.eup %2921  ;;  %2941 = vtanh.f32 %v1950_v59  ;;  %2176 = vst.msk [vmem:[%s4609_s6 + $0x18] sm:$0xff] %vm1979_vm0, %v2920_v18 }
 0x1a4   :  { %v2924_v55 = vpop.eup %2923  ;;  %2943 = vtanh.f32 %v1951_v57  ;;  %2177 = vst.msk [vmem:[%s4609_s6 + $0x20] sm:$0xff] %vm1979_vm0, %v2922_v32 }
 0x1a5   :  { %v2926_v34 = vpop.eup %2925  ;;  %2678 = vmatmul.mubr.msk.f32.gmra.mrb[42].mxu0 %vm1979_vm0, %v2920_v18  ;;  %2178 = vst.msk [vmem:[%s4609_s6 + $0x28] sm:$0xff] %vm1979_vm0, %v2924_v55 }
 0x1a6   :  { %v2928_v49 = vpop.eup %2927  ;;  %2680 = vmatprep.mubr.msk.f32.mxu0 %vm1979_vm0, %v2922_v32  ;;  %2179 = vst.msk [vmem:[%s4609_s6 + $0x30] sm:$0xff] %vm1979_vm0, %v2926_v34 }
 0x1a7   :  { %v2930_v31 = vpop.eup %2929  ;;  %2180 = vst.msk [vmem:[%s4609_s6 + $0x38] sm:$0xff] %vm1979_vm0, %v2928_v49 }
 0x1a8   :  { %v2932_v26 = vpop.eup %2931  ;;  %2181 = vst.msk [vmem:[%s4609_s6 + $0x40] sm:$0xff] %vm1979_vm0, %v2930_v31 }
 0x1a9   :  { %v2934_v11 = vpop.eup %2933  ;;  %2681 = vmatmul.mubr.msk.f32.gmra.mrb[44].mxu0 %vm1979_vm0, %v2924_v55  ;;  %2182 = vst.msk [vmem:[%s4609_s6 + $0x48] sm:$0xff] %vm1979_vm0, %v2932_v26 }
 0x1aa   :  { %v2936_v37 = vpop.eup %2935  ;;  %2683 = vmatprep.mubr.msk.f32.mxu0 %vm1979_vm0, %v2926_v34  ;;  %2183 = vst.msk [vmem:[%s4609_s6 + $0x50] sm:$0xff] %vm1979_vm0, %v2934_v11 }
 0x1ab   :  { %v2938_v23 = vpop.eup %2937  ;;  %2184 = vst.msk [vmem:[%s4609_s6 + $0x58] sm:$0xff] %vm1979_vm0, %v2936_v37 }
 0x1ac   :  { %v2940_v60 = vpop.eup %2939  ;;  %2185 = vst.msk [vmem:[%s4609_s6 + $0x60] sm:$0xff] %vm1979_vm0, %v2938_v23 }
 0x1ad   :  { %v2942_v28 = vpop.eup %2941  ;;  %2684 = vmatmul.mubr.msk.f32.gmra.mrb[46].mxu0 %vm1979_vm0, %v2928_v49  ;;  %2186 = vst.msk [vmem:[%s4609_s6 + $0x68] sm:$0xff] %vm1979_vm0, %v2940_v60 }
 0x1ae   :  { %v2944_v27 = vpop.eup %2943  ;;  %2686 = vmatprep.mubr.msk.f32.mxu0 %vm1979_vm0, %v2930_v31  ;;  %2187 = vst.msk [vmem:[%s4609_s6 + $0x70] sm:$0xff] %vm1979_vm0, %v2942_v28 }
 0x1af   :  { %2188 = vst.msk [vmem:[%s4609_s6 + $0x78] sm:$0xff] %vm1979_vm0, %v2944_v27 }
 0x1b1   :  { %2687 = vmatmul.mubr.msk.f32.gmra.mrb[48].mxu0 %vm1979_vm0, %v2932_v26 }
 0x1b2   :  { %2689 = vmatprep.mubr.msk.f32.mxu0 %vm1979_vm0, %v2934_v11 }
 0x1b5   :  { %2690 = vmatmul.mubr.msk.f32.gmra.mrb[50].mxu0 %vm1979_vm0, %v2936_v37 }
 0x1b6   :  { %2692 = vmatprep.mubr.msk.f32.mxu0 %vm1979_vm0, %v2938_v23 }
 0x1b9   :  { %2693 = vmatmul.mubr.msk.f32.gmra.mrb[52].mxu0 %vm1979_vm0, %v2940_v60 }
 0x1ba   :  { %2695 = vmatprep.mubr.msk.f32.mxu0 %vm1979_vm0, %v2942_v28 }
 0x1bd   :  { %2696 = vmatmul.mubr.msk.f32.gmra.mrb[54].mxu0 %vm1979_vm0, %v2944_v27 }
 0x274   :  { %v2676_v3 = vpop.f32.mrb[40].mxu0 }
 0x275   :  { %v2100_v56 = vadd.f32 %v2676_v3, %v2275_v4  ;;  %v2094_v43 = vpop.f32.mrb[41].mxu0 }
 0x276   :  { %v2095_v53 = vadd.f32 %v2275_v4, %v2094_v43 }
 0x277   :  { %2207 = vrot.lane.b32.xlu1 %v2100_v56, %s2951_s1 }
 0x278   :  { %v2679_v46 = vpop.f32.mrb[42].mxu0 }
 0x279   :  { %v2104_v45 = vpop.f32.mrb[43].mxu0  ;;  %v2110_v15 = vadd.f32 %v2679_v46, %v2275_v4 }
 0x27a   :  { %v2105_v33 = vadd.f32 %v2275_v4, %v2104_v45 }
 0x27b   :  { %2205 = vrot.lane.b32.xlu1 %v2095_v53, %s2951_s1 }
 0x27c   :  { %2209 = vrot.lane.b32.xlu0 %v2105_v33, %s2951_s1  ;;  %v2682_v20 = vpop.f32.mrb[44].mxu0 }
 0x27d   :  { %v2114_v7 = vpop.f32.mrb[45].mxu0  ;;  %v2120_v22 = vadd.f32 %v2682_v20, %v2275_v4 }
 0x27e   :  { %v2115_v58 = vadd.f32 %v2275_v4, %v2114_v7 }
 0x27f   :  { %2211 = vrot.lane.b32.xlu1 %v2110_v15, %s2951_s1 }
 0x280   :  { %2213 = vrot.lane.b32.xlu0 %v2115_v58, %s2951_s1  ;;  %v2685_v29 = vpop.f32.mrb[46].mxu0 }
 0x281   :  { %v2124_v25 = vpop.f32.mrb[47].mxu0  ;;  %v2130_v24 = vadd.f32 %v2685_v29, %v2275_v4 }
 0x282   :  { %v2125_v16 = vadd.f32 %v2275_v4, %v2124_v25 }
 0x283   :  { %2215 = vrot.lane.b32.xlu1 %v2120_v22, %s2951_s1 }
 0x284   :  { %v2688_v52 = vpop.f32.mrb[48].mxu0  ;;  %2217 = vrot.lane.b32.xlu0 %v2125_v16, %s2951_s1 }
 0x285   :  { %v2134_v21 = vpop.f32.mrb[49].mxu0  ;;  %v2140_v38 = vadd.f32 %v2688_v52, %v2275_v4 }
 0x286   :  { %v2135_v44 = vadd.f32 %v2275_v4, %v2134_v21 }
 0x287   :  { %2219 = vrot.lane.b32.xlu1 %v2130_v24, %s2951_s1 }
 0x288   :  { %v2691_v14 = vpop.f32.mrb[50].mxu0  ;;  %2221 = vrot.lane.b32.xlu0 %v2135_v44, %s2951_s1 }
 0x289   :  { %v2144_v41 = vpop.f32.mrb[51].mxu0  ;;  %v2150_v47 = vadd.f32 %v2691_v14, %v2275_v4 }
 0x28a   :  { %v2145_v17 = vadd.f32 %v2275_v4, %v2144_v41 }
 0x28b   :  { %2223 = vrot.lane.b32.xlu1 %v2140_v38, %s2951_s1 }
 0x28c   :  { %v2694_v6 = vpop.f32.mrb[52].mxu0  ;;  %2225 = vrot.lane.b32.xlu0 %v2145_v17, %s2951_s1 }
 0x28d   :  { %v2154_v50 = vpop.f32.mrb[53].mxu0  ;;  %v2160_v2 = vadd.f32 %v2694_v6, %v2275_v4 }
 0x28e   :  { %v2155_v5 = vadd.f32 %v2275_v4, %v2154_v50 }
 0x28f   :  { %2227 = vrot.lane.b32.xlu1 %v2150_v47, %s2951_s1 }
 0x290   :  { %v2697_v54 = vpop.f32.mrb[54].mxu0  ;;  %2229 = vrot.lane.b32.xlu0 %v2155_v5, %s2951_s1 }
 0x291   :  { %v2164_v9 = vpop.f32.mrb[55].mxu0  ;;  %v2170_v8 = vadd.f32 %v2697_v54, %v2275_v4 }
 0x292   :  { %v2165_v12 = vadd.f32 %v2275_v4, %v2164_v9 }
 0x293   :  { %2231 = vrot.lane.b32.xlu1 %v2160_v2, %s2951_s1 }
 0x294   :  { %2233 = vrot.lane.b32.xlu0 %v2165_v12, %s2951_s1 }
 0x297   :  { %2235 = vrot.lane.b32.xlu1 %v2170_v8, %s2951_s1 }
 0x2e9   :  { %v2208_v51 = vpop.permute.xlu1 %2207 }
 0x2ea   :  { %2255 = vst.msk [vmem:[%s4609_s6 + $0x8] sm:$0xff] %vm2253_vm1, %v2208_v51 }
 0x2ed   :  { %v2206_v63 = vpop.permute.xlu1 %2205 }
 0x2ee   :  { %2254 = vst.msk [vmem:[%s4609_s6] sm:$0xff] %vm2253_vm1, %v2206_v63  ;;  %v2210_v61 = vpop.permute.xlu0 %2209 }
 0x2ef   :  { %2256 = vst.msk [vmem:[%s4609_s6 + $0x10] sm:$0xff] %vm2253_vm1, %v2210_v61 }
 0x2f1   :  { %v2212_v48 = vpop.permute.xlu1 %2211 }
 0x2f2   :  { %2257 = vst.msk [vmem:[%s4609_s6 + $0x18] sm:$0xff] %vm2253_vm1, %v2212_v48  ;;  %v2214_v13 = vpop.permute.xlu0 %2213 }
 0x2f3   :  { %2258 = vst.msk [vmem:[%s4609_s6 + $0x20] sm:$0xff] %vm2253_vm1, %v2214_v13 }
 0x2f5   :  { %v2216_v19 = vpop.permute.xlu1 %2215 }
 0x2f6   :  { %2259 = vst.msk [vmem:[%s4609_s6 + $0x28] sm:$0xff] %vm2253_vm1, %v2216_v19  ;;  %v2218_v0 = vpop.permute.xlu0 %2217 }
 0x2f7   :  { %2260 = vst.msk [vmem:[%s4609_s6 + $0x30] sm:$0xff] %vm2253_vm1, %v2218_v0 }
 0x2f9   :  { %v2220_v30 = vpop.permute.xlu1 %2219 }
 0x2fa   :  { %2261 = vst.msk [vmem:[%s4609_s6 + $0x38] sm:$0xff] %vm2253_vm1, %v2220_v30  ;;  %v2222_v36 = vpop.permute.xlu0 %2221 }
 0x2fb   :  { %2262 = vst.msk [vmem:[%s4609_s6 + $0x40] sm:$0xff] %vm2253_vm1, %v2222_v36 }
 0x2fd   :  { %v2224_v62 = vpop.permute.xlu1 %2223 }
 0x2fe   :  { %2263 = vst.msk [vmem:[%s4609_s6 + $0x48] sm:$0xff] %vm2253_vm1, %v2224_v62  ;;  %v2226_v42 = vpop.permute.xlu0 %2225 }
 0x2ff   :  { %2264 = vst.msk [vmem:[%s4609_s6 + $0x50] sm:$0xff] %vm2253_vm1, %v2226_v42 }
 0x301   :  { %v2228_v10 = vpop.permute.xlu1 %2227 }
 0x302   :  { %2265 = vst.msk [vmem:[%s4609_s6 + $0x58] sm:$0xff] %vm2253_vm1, %v2228_v10  ;;  %v2230_v35 = vpop.permute.xlu0 %2229 }
 0x303   :  { %2266 = vst.msk [vmem:[%s4609_s6 + $0x60] sm:$0xff] %vm2253_vm1, %v2230_v35 }
 0x305   :  { %v2232_v59 = vpop.permute.xlu1 %2231 }
 0x306   :  { %2267 = vst.msk [vmem:[%s4609_s6 + $0x68] sm:$0xff] %vm2253_vm1, %v2232_v59  ;;  %v2234_v1 = vpop.permute.xlu0 %2233 }
 0x307   :  { %2268 = vst.msk [vmem:[%s4609_s6 + $0x70] sm:$0xff] %vm2253_vm1, %v2234_v1 }
 0x309   :  { %v2236_v39 = vpop.permute.xlu1 %2235 }
 0x30a   :  { %2269 = vst.msk [vmem:[%s4609_s6 + $0x78] sm:$0xff] %vm2253_vm1, %v2236_v39 }

</bundles_post_ra>
